<compile_context>
chip_gen: v7x
topology: tpu7x:2x2x1
jax: 0.10.0
libtpu: 0.0.40
codegen_flags: <defaults>
</compile_context>

<pallas_src>
import numpy as np
import jax
import jax.numpy as jnp
from jax import lax
from jax.experimental import pallas as pl
from jax.experimental.pallas import tpu as pltpu


NEG = -1e30  # "minus infinity" for padded classes (avoids inf-inf NaN traps)


def crf_viterbi_kernel(x_ref, u_ref, bs_ref, be_ref, y_ref, bp_ref):
    """Viterbi decode (max-product forward + backtrace) for one batch tile.

    Layout: classes on sublanes, the batch tile on lanes.

    x_ref : (T, Cp, Bt) f32  emissions (class c of sequence b at x[t, c, b])
    u_ref : (Cp, Cp)    f32  transition energies U[i, j] = score(prev=i -> next=j)
    bs_ref: (Cp, 1)     f32  start-boundary energy (added at t=0)
    be_ref: (Cp, 1)     f32  end-boundary energy   (added at t=T-1)
    y_ref : (T, 1, Bt)  i32  decoded labels
    bp_ref: (T, Cp, Bt) i32  VMEM scratch: backpointers per timestep (slot 0 unused)
    """
    T, Cp, Bt = x_ref.shape

    class_iota = lax.broadcasted_iota(jnp.int32, (Cp, Bt), 0)  # class id / sublane
    U = u_ref[...]                                             # (Cp, Cp)
    # Hoisted lane-broadcast of every transition column (loop-invariant).
    # NOTE: the per-next-class loop below unrolls Cp times; this kernel targets
    # small NER-style class counts (Cp is 8 here).
    u_cols = [jnp.broadcast_to(U[:, j:j + 1], (Cp, Bt)) for j in range(Cp)]

    # ---- forward max-product recursion -------------------------------------
    alpha0 = x_ref[0] + bs_ref[...]                            # (Cp, Bt)

    def fwd_body(t, alpha):
        # For next class j: scores_j[i, b] = alpha[i, b] + U[i, j].
        # The emission x[t, j, b] is constant over the reduced axis i, so it is
        # added once AFTER the max (it cannot change the argmax).
        m_rows, bp_rows = [], []
        for j in range(Cp):
            s_j = alpha + u_cols[j]                            # (Cp, Bt)
            m_j = jnp.max(s_j, axis=0, keepdims=True)          # (1, Bt)
            b_j = jnp.min(jnp.where(s_j >= m_j, class_iota, Cp),
                          axis=0, keepdims=True)               # first-occurrence argmax
            m_rows.append(m_j)
            bp_rows.append(b_j)
        bp_ref[t] = jnp.concatenate(bp_rows, axis=0)           # (Cp, Bt) i32
        return jnp.concatenate(m_rows, axis=0) + x_ref[t]      # new alpha (Cp, Bt)

    if T > 1:
        alpha = lax.fori_loop(1, T, fwd_body, alpha0,
                              unroll=True if T <= 16 else 4)
    else:
        alpha = alpha0
    # End-boundary energy is per-next-class -> never affects the backpointers.
    alpha = alpha + be_ref[...]

    # ---- final argmax + backtrace ------------------------------------------
    m_last = jnp.max(alpha, axis=0, keepdims=True)             # (1, Bt)
    y_last = jnp.min(jnp.where(alpha >= m_last, class_iota, Cp),
                     axis=0, keepdims=True).astype(jnp.int32)  # (1, Bt)
    y_ref[T - 1] = y_last

    def bwd_body(s, y_next):
        t = T - 2 - s
        bp_row = bp_ref[t + 1]                                 # (Cp, Bt)
        # gather: y_t[b] = bp_row[y_next[b], b]  (one-hot select + sublane sum)
        y_t = jnp.sum(jnp.where(class_iota == y_next, bp_row, 0),
                      axis=0, keepdims=True)                   # (1, Bt)
        y_ref[t] = y_t
        return y_t

    if T > 1:
        lax.fori_loop(0, T - 1, bwd_body, y_last,
                      unroll=True if T <= 16 else 8)


def chain_crf_viterbi(x, U, b_start, b_end):
    """ChainCRF.forward (== viterbi_decode(x), no mask)."""
    B, T, C = x.shape
    Cp = max(8, ((C + 7) // 8) * 8)        # pad classes to sublane granularity only

    # Batch tiling: batch lives on lanes (<=128 per grid step); keep >=2 grid
    # steps when possible so v7x's two TensorCores both get work.
    if B >= 2:
        G = max(2, -(-B // 128))
    else:
        G = 1
    Bt = -(-B // G)
    G = -(-B // Bt)
    B_pad = G * Bt

    # Pad classes: emissions -> NEG (never selected), transitions/biases -> 0.
    # Pad batches (if any) get zero emissions on the real classes (harmless).
    x_p = jnp.full((B_pad, T, Cp), NEG, jnp.float32)
    x_p = x_p.at[:B, :, :C].set(x.astype(jnp.float32))
    if B_pad > B:
        x_p = x_p.at[B:, :, :C].set(0.0)
    # (B_pad, T, Cp) -> (G, T, Cp, Bt): classes on sublanes, batch tile on lanes.
    x_p = x_p.reshape(G, Bt, T, Cp).transpose(0, 2, 3, 1)

    U_p = jnp.zeros((Cp, Cp), jnp.float32).at[:C, :C].set(U.astype(jnp.float32))
    bs_p = jnp.zeros((Cp, 1), jnp.float32).at[:C, 0].set(
        b_start.astype(jnp.float32))
    be_p = jnp.zeros((Cp, 1), jnp.float32).at[:C, 0].set(
        b_end.astype(jnp.float32))

    y_out = pl.pallas_call(
        crf_viterbi_kernel,
        out_shape=jax.ShapeDtypeStruct((G, T, 1, Bt), jnp.int32),
        grid=(G,),
        in_specs=[
            pl.BlockSpec((None, T, Cp, Bt), lambda i: (i, 0, 0, 0)),  # emissions
            pl.BlockSpec((Cp, Cp), lambda i: (0, 0)),                 # U (shared)
            pl.BlockSpec((Cp, 1), lambda i: (0, 0)),                  # b_start
            pl.BlockSpec((Cp, 1), lambda i: (0, 0)),                  # b_end
        ],
        out_specs=pl.BlockSpec((None, T, 1, Bt), lambda i: (i, 0, 0, 0)),
        scratch_shapes=[pltpu.VMEM((T, Cp, Bt), jnp.int32)],          # backpointers
        compiler_params=pltpu.CompilerParams(
            dimension_semantics=("parallel",),   # shard batch tiles over TCs (v7x)
            vmem_limit_bytes=32 * 1024 * 1024,   # safe on v5e/v6e/v7x
        ),
    )(x_p, U_p, bs_p, be_p)

    # (G, T, 1, Bt) -> (B, T)
    y = y_out[:, :, 0, :].transpose(0, 2, 1).reshape(B_pad, T)
    return y[:B]


def viterbi_reference(x, U, b_start, b_end):
    """Pure numpy reference (same semantics, first-occurrence argmax)."""
    x = np.asarray(x, dtype=np.float32).copy()
    U = np.asarray(U, dtype=np.float32)
    x[:, 0, :] += np.asarray(b_start, dtype=np.float32)
    x[:, -1, :] += np.asarray(b_end, dtype=np.float32)
    B, T, C = x.shape
    y = np.zeros((B, T), dtype=np.int32)
    for b in range(B):
        alpha = x[b, 0, :].copy()
        bp = np.zeros((T, C), dtype=np.int32)
        for t in range(1, T):
            scores = alpha[:, None] + U        # emission is column-constant
            bp[t] = np.argmax(scores, axis=0)  # -> argmax unaffected
            alpha = np.max(scores, axis=0) + x[b, t]
        y[b, T - 1] = np.argmax(alpha)
        for t in range(T - 2, -1, -1):
            y[b, t] = bp[t + 1, y[b, t + 1]]
    return y


if __name__ == "__main__":
    num_classes = 5
    B, T = 2, 4

    key = jax.random.PRNGKey(0)
    kx, ku = jax.random.split(key)
    # x ~ torch.rand(2, 4, num_classes)
    x = jax.random.uniform(kx, (B, T, num_classes), dtype=jnp.float32)
    # Parameters (same shapes as ChainCRF.__init__):
    U = jax.random.uniform(ku, (num_classes, num_classes), dtype=jnp.float32)
    b_start = jnp.zeros((num_classes,), dtype=jnp.float32)
    b_end = jnp.zeros((num_classes,), dtype=jnp.float32)

    y = chain_crf_viterbi(x, U, b_start, b_end)
    y = jax.block_until_ready(y)

    y_ref = viterbi_reference(x, U, b_start, b_end)
    np.testing.assert_array_equal(np.asarray(y), y_ref)

    print("KERNEL_OK")
</pallas_src>

<mosaic_0001>
module attributes {stable_mosaic.version = 11 : i64} {
  func.func @crf_viterbi_kernel(%arg0: i32, %arg1: memref<1x4x8x1xf32, #tpu.memory_space<vmem>>, %arg2: memref<8x8xf32, #tpu.memory_space<vmem>>, %arg3: memref<8x1xf32, #tpu.memory_space<vmem>>, %arg4: memref<8x1xf32, #tpu.memory_space<vmem>>, %arg5: memref<1x4x1x1xi32, #tpu.memory_space<vmem>>, %arg6: memref<4x8x1xi32, #tpu.memory_space<vmem>>) attributes {dimension_semantics = [#tpu.dimension_semantics<parallel>], iteration_bounds = array<i64: 2>, scalar_prefetch = 0 : i64, scratch_operands = 1 : i64, tpu.core_type = #tpu.core_type<tc>, window_params = [{transform_indices = @transform_0, window_bounds = array<i64: 1, 4, 8, 1>}, {pipeline_mode = #tpu.pipeline_mode<synchronous>, transform_indices = @transform_1, window_bounds = array<i64: 8, 8>}, {pipeline_mode = #tpu.pipeline_mode<synchronous>, transform_indices = @transform_2, window_bounds = array<i64: 8, 1>}, {pipeline_mode = #tpu.pipeline_mode<synchronous>, transform_indices = @transform_3, window_bounds = array<i64: 8, 1>}, {transform_indices = @transform_4, window_bounds = array<i64: 1, 4, 1, 1>}]} {
    %0 = tpu.iota {dimensions = array<i32: 0>} : vector<8x1xi32>
    %c0 = arith.constant 0 : index
    %c0_0 = arith.constant 0 : index
    %1 = vector.load %arg2[%c0, %c0_0] : memref<8x8xf32, #tpu.memory_space<vmem>>, vector<8x8xf32>
    %2 = vector.extract_strided_slice %1 {offsets = [0, 0], sizes = [8, 1], strides = [1, 1]} : vector<8x8xf32> to vector<8x1xf32>
    %3 = vector.extract_strided_slice %1 {offsets = [0, 1], sizes = [8, 1], strides = [1, 1]} : vector<8x8xf32> to vector<8x1xf32>
    %4 = vector.extract_strided_slice %1 {offsets = [0, 2], sizes = [8, 1], strides = [1, 1]} : vector<8x8xf32> to vector<8x1xf32>
    %5 = vector.extract_strided_slice %1 {offsets = [0, 3], sizes = [8, 1], strides = [1, 1]} : vector<8x8xf32> to vector<8x1xf32>
    %6 = vector.extract_strided_slice %1 {offsets = [0, 4], sizes = [8, 1], strides = [1, 1]} : vector<8x8xf32> to vector<8x1xf32>
    %7 = vector.extract_strided_slice %1 {offsets = [0, 5], sizes = [8, 1], strides = [1, 1]} : vector<8x8xf32> to vector<8x1xf32>
    %8 = vector.extract_strided_slice %1 {offsets = [0, 6], sizes = [8, 1], strides = [1, 1]} : vector<8x8xf32> to vector<8x1xf32>
    %9 = vector.extract_strided_slice %1 {offsets = [0, 7], sizes = [8, 1], strides = [1, 1]} : vector<8x8xf32> to vector<8x1xf32>
    %c0_1 = arith.constant 0 : index
    %c0_2 = arith.constant 0 : index
    %c0_3 = arith.constant 0 : index
    %c0_4 = arith.constant 0 : index
    %10 = vector.load %arg1[%c0_1, %c0_2, %c0_3, %c0_4] : memref<1x4x8x1xf32, #tpu.memory_space<vmem>>, vector<1x1x8x1xf32>
    %11 = vector.shape_cast %10 : vector<1x1x8x1xf32> to vector<8x1xf32>
    %c0_5 = arith.constant 0 : index
    %c0_6 = arith.constant 0 : index
    %12 = vector.load %arg3[%c0_5, %c0_6] : memref<8x1xf32, #tpu.memory_space<vmem>>, vector<8x1xf32>
    %13 = arith.addf %11, %12 : vector<8x1xf32>
    %c1_i32 = arith.constant 1 : i32
    %14 = arith.addf %13, %2 : vector<8x1xf32>
    %cst = arith.constant dense<0xFF800000> : vector<1xf32>
    %15 = vector.multi_reduction <maximumf>, %14, %cst [0] : vector<8x1xf32> to vector<1xf32>
    %16 = vector.shape_cast %15 : vector<1xf32> to vector<1x1xf32>
    %17 = vector.broadcast %16 : vector<1x1xf32> to vector<8x1xf32>
    %18 = arith.cmpf oge, %14, %17 : vector<8x1xf32>
    %c8_i32 = arith.constant 8 : i32
    %19 = vector.broadcast %c8_i32 : i32 to vector<8x1xi32>
    %20 = arith.select %18, %0, %19 : vector<8x1xi1>, vector<8x1xi32>
    %cst_7 = arith.constant dense<2147483647> : vector<1xi32>
    %21 = vector.multi_reduction <minsi>, %20, %cst_7 [0] : vector<8x1xi32> to vector<1xi32>
    %22 = vector.shape_cast %21 : vector<1xi32> to vector<1x1xi32>
    %23 = arith.addf %13, %3 : vector<8x1xf32>
    %cst_8 = arith.constant dense<0xFF800000> : vector<1xf32>
    %24 = vector.multi_reduction <maximumf>, %23, %cst_8 [0] : vector<8x1xf32> to vector<1xf32>
    %25 = vector.shape_cast %24 : vector<1xf32> to vector<1x1xf32>
    %26 = vector.broadcast %25 : vector<1x1xf32> to vector<8x1xf32>
    %27 = arith.cmpf oge, %23, %26 : vector<8x1xf32>
    %c8_i32_9 = arith.constant 8 : i32
    %28 = vector.broadcast %c8_i32_9 : i32 to vector<8x1xi32>
    %29 = arith.select %27, %0, %28 : vector<8x1xi1>, vector<8x1xi32>
    %cst_10 = arith.constant dense<2147483647> : vector<1xi32>
    %30 = vector.multi_reduction <minsi>, %29, %cst_10 [0] : vector<8x1xi32> to vector<1xi32>
    %31 = vector.shape_cast %30 : vector<1xi32> to vector<1x1xi32>
    %32 = arith.addf %13, %4 : vector<8x1xf32>
    %cst_11 = arith.constant dense<0xFF800000> : vector<1xf32>
    %33 = vector.multi_reduction <maximumf>, %32, %cst_11 [0] : vector<8x1xf32> to vector<1xf32>
    %34 = vector.shape_cast %33 : vector<1xf32> to vector<1x1xf32>
    %35 = vector.broadcast %34 : vector<1x1xf32> to vector<8x1xf32>
    %36 = arith.cmpf oge, %32, %35 : vector<8x1xf32>
    %c8_i32_12 = arith.constant 8 : i32
    %37 = vector.broadcast %c8_i32_12 : i32 to vector<8x1xi32>
    %38 = arith.select %36, %0, %37 : vector<8x1xi1>, vector<8x1xi32>
    %cst_13 = arith.constant dense<2147483647> : vector<1xi32>
    %39 = vector.multi_reduction <minsi>, %38, %cst_13 [0] : vector<8x1xi32> to vector<1xi32>
    %40 = vector.shape_cast %39 : vector<1xi32> to vector<1x1xi32>
    %41 = arith.addf %13, %5 : vector<8x1xf32>
    %cst_14 = arith.constant dense<0xFF800000> : vector<1xf32>
    %42 = vector.multi_reduction <maximumf>, %41, %cst_14 [0] : vector<8x1xf32> to vector<1xf32>
    %43 = vector.shape_cast %42 : vector<1xf32> to vector<1x1xf32>
    %44 = vector.broadcast %43 : vector<1x1xf32> to vector<8x1xf32>
    %45 = arith.cmpf oge, %41, %44 : vector<8x1xf32>
    %c8_i32_15 = arith.constant 8 : i32
    %46 = vector.broadcast %c8_i32_15 : i32 to vector<8x1xi32>
    %47 = arith.select %45, %0, %46 : vector<8x1xi1>, vector<8x1xi32>
    %cst_16 = arith.constant dense<2147483647> : vector<1xi32>
    %48 = vector.multi_reduction <minsi>, %47, %cst_16 [0] : vector<8x1xi32> to vector<1xi32>
    %49 = vector.shape_cast %48 : vector<1xi32> to vector<1x1xi32>
    %50 = arith.addf %13, %6 : vector<8x1xf32>
    %cst_17 = arith.constant dense<0xFF800000> : vector<1xf32>
    %51 = vector.multi_reduction <maximumf>, %50, %cst_17 [0] : vector<8x1xf32> to vector<1xf32>
    %52 = vector.shape_cast %51 : vector<1xf32> to vector<1x1xf32>
    %53 = vector.broadcast %52 : vector<1x1xf32> to vector<8x1xf32>
    %54 = arith.cmpf oge, %50, %53 : vector<8x1xf32>
    %c8_i32_18 = arith.constant 8 : i32
    %55 = vector.broadcast %c8_i32_18 : i32 to vector<8x1xi32>
    %56 = arith.select %54, %0, %55 : vector<8x1xi1>, vector<8x1xi32>
    %cst_19 = arith.constant dense<2147483647> : vector<1xi32>
    %57 = vector.multi_reduction <minsi>, %56, %cst_19 [0] : vector<8x1xi32> to vector<1xi32>
    %58 = vector.shape_cast %57 : vector<1xi32> to vector<1x1xi32>
    %59 = arith.addf %13, %7 : vector<8x1xf32>
    %cst_20 = arith.constant dense<0xFF800000> : vector<1xf32>
    %60 = vector.multi_reduction <maximumf>, %59, %cst_20 [0] : vector<8x1xf32> to vector<1xf32>
    %61 = vector.shape_cast %60 : vector<1xf32> to vector<1x1xf32>
    %62 = vector.broadcast %61 : vector<1x1xf32> to vector<8x1xf32>
    %63 = arith.cmpf oge, %59, %62 : vector<8x1xf32>
    %c8_i32_21 = arith.constant 8 : i32
    %64 = vector.broadcast %c8_i32_21 : i32 to vector<8x1xi32>
    %65 = arith.select %63, %0, %64 : vector<8x1xi1>, vector<8x1xi32>
    %cst_22 = arith.constant dense<2147483647> : vector<1xi32>
    %66 = vector.multi_reduction <minsi>, %65, %cst_22 [0] : vector<8x1xi32> to vector<1xi32>
    %67 = vector.shape_cast %66 : vector<1xi32> to vector<1x1xi32>
    %68 = arith.addf %13, %8 : vector<8x1xf32>
    %cst_23 = arith.constant dense<0xFF800000> : vector<1xf32>
    %69 = vector.multi_reduction <maximumf>, %68, %cst_23 [0] : vector<8x1xf32> to vector<1xf32>
    %70 = vector.shape_cast %69 : vector<1xf32> to vector<1x1xf32>
    %71 = vector.broadcast %70 : vector<1x1xf32> to vector<8x1xf32>
    %72 = arith.cmpf oge, %68, %71 : vector<8x1xf32>
    %c8_i32_24 = arith.constant 8 : i32
    %73 = vector.broadcast %c8_i32_24 : i32 to vector<8x1xi32>
    %74 = arith.select %72, %0, %73 : vector<8x1xi1>, vector<8x1xi32>
    %cst_25 = arith.constant dense<2147483647> : vector<1xi32>
    %75 = vector.multi_reduction <minsi>, %74, %cst_25 [0] : vector<8x1xi32> to vector<1xi32>
    %76 = vector.shape_cast %75 : vector<1xi32> to vector<1x1xi32>
    %77 = arith.addf %13, %9 : vector<8x1xf32>
    %cst_26 = arith.constant dense<0xFF800000> : vector<1xf32>
    %78 = vector.multi_reduction <maximumf>, %77, %cst_26 [0] : vector<8x1xf32> to vector<1xf32>
    %79 = vector.shape_cast %78 : vector<1xf32> to vector<1x1xf32>
    %80 = vector.broadcast %79 : vector<1x1xf32> to vector<8x1xf32>
    %81 = arith.cmpf oge, %77, %80 : vector<8x1xf32>
    %c8_i32_27 = arith.constant 8 : i32
    %82 = vector.broadcast %c8_i32_27 : i32 to vector<8x1xi32>
    %83 = arith.select %81, %0, %82 : vector<8x1xi1>, vector<8x1xi32>
    %cst_28 = arith.constant dense<2147483647> : vector<1xi32>
    %84 = vector.multi_reduction <minsi>, %83, %cst_28 [0] : vector<8x1xi32> to vector<1xi32>
    %85 = vector.shape_cast %84 : vector<1xi32> to vector<1x1xi32>
    %86 = tpu.concatenate %22, %31, %40, %49, %58, %67, %76, %85 in 0 : vector<1x1xi32>, vector<1x1xi32>, vector<1x1xi32>, vector<1x1xi32>, vector<1x1xi32>, vector<1x1xi32>, vector<1x1xi32>, vector<1x1xi32> -> vector<8x1xi32>
    %87 = arith.index_cast %c1_i32 : i32 to index
    %c0_29 = arith.constant 0 : index
    %c0_30 = arith.constant 0 : index
    %88 = vector.load %arg6[%87, %c0_29, %c0_30] : memref<4x8x1xi32, #tpu.memory_space<vmem>>, vector<1x8x1xi32>
    %89 = vector.shape_cast %88 : vector<1x8x1xi32> to vector<8x1xi32>
    %90 = vector.shape_cast %86 : vector<8x1xi32> to vector<1x8x1xi32>
    tpu.vector_store %arg6[%87, %c0_29, %c0_30], %90 {strides = array<i32>} : memref<4x8x1xi32, #tpu.memory_space<vmem>>, vector<1x8x1xi32>,
    %91 = tpu.concatenate %16, %25, %34, %43, %52, %61, %70, %79 in 0 : vector<1x1xf32>, vector<1x1xf32>, vector<1x1xf32>, vector<1x1xf32>, vector<1x1xf32>, vector<1x1xf32>, vector<1x1xf32>, vector<1x1xf32> -> vector<8x1xf32>
    %c0_31 = arith.constant 0 : index
    %92 = arith.index_cast %c1_i32 : i32 to index
    %c0_32 = arith.constant 0 : index
    %c0_33 = arith.constant 0 : index
    %93 = vector.load %arg1[%c0_31, %92, %c0_32, %c0_33] : memref<1x4x8x1xf32, #tpu.memory_space<vmem>>, vector<1x1x8x1xf32>
    %94 = vector.shape_cast %93 : vector<1x1x8x1xf32> to vector<8x1xf32>
    %95 = arith.addf %91, %94 : vector<8x1xf32>
    %c2_i32 = arith.constant 2 : i32
    %96 = arith.addf %95, %2 : vector<8x1xf32>
    %cst_34 = arith.constant dense<0xFF800000> : vector<1xf32>
    %97 = vector.multi_reduction <maximumf>, %96, %cst_34 [0] : vector<8x1xf32> to vector<1xf32>
    %98 = vector.shape_cast %97 : vector<1xf32> to vector<1x1xf32>
    %99 = vector.broadcast %98 : vector<1x1xf32> to vector<8x1xf32>
    %100 = arith.cmpf oge, %96, %99 : vector<8x1xf32>
    %c8_i32_35 = arith.constant 8 : i32
    %101 = vector.broadcast %c8_i32_35 : i32 to vector<8x1xi32>
    %102 = arith.select %100, %0, %101 : vector<8x1xi1>, vector<8x1xi32>
    %cst_36 = arith.constant dense<2147483647> : vector<1xi32>
    %103 = vector.multi_reduction <minsi>, %102, %cst_36 [0] : vector<8x1xi32> to vector<1xi32>
    %104 = vector.shape_cast %103 : vector<1xi32> to vector<1x1xi32>
    %105 = arith.addf %95, %3 : vector<8x1xf32>
    %cst_37 = arith.constant dense<0xFF800000> : vector<1xf32>
    %106 = vector.multi_reduction <maximumf>, %105, %cst_37 [0] : vector<8x1xf32> to vector<1xf32>
    %107 = vector.shape_cast %106 : vector<1xf32> to vector<1x1xf32>
    %108 = vector.broadcast %107 : vector<1x1xf32> to vector<8x1xf32>
    %109 = arith.cmpf oge, %105, %108 : vector<8x1xf32>
    %c8_i32_38 = arith.constant 8 : i32
    %110 = vector.broadcast %c8_i32_38 : i32 to vector<8x1xi32>
    %111 = arith.select %109, %0, %110 : vector<8x1xi1>, vector<8x1xi32>
    %cst_39 = arith.constant dense<2147483647> : vector<1xi32>
    %112 = vector.multi_reduction <minsi>, %111, %cst_39 [0] : vector<8x1xi32> to vector<1xi32>
    %113 = vector.shape_cast %112 : vector<1xi32> to vector<1x1xi32>
    %114 = arith.addf %95, %4 : vector<8x1xf32>
    %cst_40 = arith.constant dense<0xFF800000> : vector<1xf32>
    %115 = vector.multi_reduction <maximumf>, %114, %cst_40 [0] : vector<8x1xf32> to vector<1xf32>
    %116 = vector.shape_cast %115 : vector<1xf32> to vector<1x1xf32>
    %117 = vector.broadcast %116 : vector<1x1xf32> to vector<8x1xf32>
    %118 = arith.cmpf oge, %114, %117 : vector<8x1xf32>
    %c8_i32_41 = arith.constant 8 : i32
    %119 = vector.broadcast %c8_i32_41 : i32 to vector<8x1xi32>
    %120 = arith.select %118, %0, %119 : vector<8x1xi1>, vector<8x1xi32>
    %cst_42 = arith.constant dense<2147483647> : vector<1xi32>
    %121 = vector.multi_reduction <minsi>, %120, %cst_42 [0] : vector<8x1xi32> to vector<1xi32>
    %122 = vector.shape_cast %121 : vector<1xi32> to vector<1x1xi32>
    %123 = arith.addf %95, %5 : vector<8x1xf32>
    %cst_43 = arith.constant dense<0xFF800000> : vector<1xf32>
    %124 = vector.multi_reduction <maximumf>, %123, %cst_43 [0] : vector<8x1xf32> to vector<1xf32>
    %125 = vector.shape_cast %124 : vector<1xf32> to vector<1x1xf32>
    %126 = vector.broadcast %125 : vector<1x1xf32> to vector<8x1xf32>
    %127 = arith.cmpf oge, %123, %126 : vector<8x1xf32>
    %c8_i32_44 = arith.constant 8 : i32
    %128 = vector.broadcast %c8_i32_44 : i32 to vector<8x1xi32>
    %129 = arith.select %127, %0, %128 : vector<8x1xi1>, vector<8x1xi32>
    %cst_45 = arith.constant dense<2147483647> : vector<1xi32>
    %130 = vector.multi_reduction <minsi>, %129, %cst_45 [0] : vector<8x1xi32> to vector<1xi32>
    %131 = vector.shape_cast %130 : vector<1xi32> to vector<1x1xi32>
    %132 = arith.addf %95, %6 : vector<8x1xf32>
    %cst_46 = arith.constant dense<0xFF800000> : vector<1xf32>
    %133 = vector.multi_reduction <maximumf>, %132, %cst_46 [0] : vector<8x1xf32> to vector<1xf32>
    %134 = vector.shape_cast %133 : vector<1xf32> to vector<1x1xf32>
    %135 = vector.broadcast %134 : vector<1x1xf32> to vector<8x1xf32>
    %136 = arith.cmpf oge, %132, %135 : vector<8x1xf32>
    %c8_i32_47 = arith.constant 8 : i32
    %137 = vector.broadcast %c8_i32_47 : i32 to vector<8x1xi32>
    %138 = arith.select %136, %0, %137 : vector<8x1xi1>, vector<8x1xi32>
    %cst_48 = arith.constant dense<2147483647> : vector<1xi32>
    %139 = vector.multi_reduction <minsi>, %138, %cst_48 [0] : vector<8x1xi32> to vector<1xi32>
    %140 = vector.shape_cast %139 : vector<1xi32> to vector<1x1xi32>
    %141 = arith.addf %95, %7 : vector<8x1xf32>
    %cst_49 = arith.constant dense<0xFF800000> : vector<1xf32>
    %142 = vector.multi_reduction <maximumf>, %141, %cst_49 [0] : vector<8x1xf32> to vector<1xf32>
    %143 = vector.shape_cast %142 : vector<1xf32> to vector<1x1xf32>
    %144 = vector.broadcast %143 : vector<1x1xf32> to vector<8x1xf32>
    %145 = arith.cmpf oge, %141, %144 : vector<8x1xf32>
    %c8_i32_50 = arith.constant 8 : i32
    %146 = vector.broadcast %c8_i32_50 : i32 to vector<8x1xi32>
    %147 = arith.select %145, %0, %146 : vector<8x1xi1>, vector<8x1xi32>
    %cst_51 = arith.constant dense<2147483647> : vector<1xi32>
    %148 = vector.multi_reduction <minsi>, %147, %cst_51 [0] : vector<8x1xi32> to vector<1xi32>
    %149 = vector.shape_cast %148 : vector<1xi32> to vector<1x1xi32>
    %150 = arith.addf %95, %8 : vector<8x1xf32>
    %cst_52 = arith.constant dense<0xFF800000> : vector<1xf32>
    %151 = vector.multi_reduction <maximumf>, %150, %cst_52 [0] : vector<8x1xf32> to vector<1xf32>
    %152 = vector.shape_cast %151 : vector<1xf32> to vector<1x1xf32>
    %153 = vector.broadcast %152 : vector<1x1xf32> to vector<8x1xf32>
    %154 = arith.cmpf oge, %150, %153 : vector<8x1xf32>
    %c8_i32_53 = arith.constant 8 : i32
    %155 = vector.broadcast %c8_i32_53 : i32 to vector<8x1xi32>
    %156 = arith.select %154, %0, %155 : vector<8x1xi1>, vector<8x1xi32>
    %cst_54 = arith.constant dense<2147483647> : vector<1xi32>
    %157 = vector.multi_reduction <minsi>, %156, %cst_54 [0] : vector<8x1xi32> to vector<1xi32>
    %158 = vector.shape_cast %157 : vector<1xi32> to vector<1x1xi32>
    %159 = arith.addf %95, %9 : vector<8x1xf32>
    %cst_55 = arith.constant dense<0xFF800000> : vector<1xf32>
    %160 = vector.multi_reduction <maximumf>, %159, %cst_55 [0] : vector<8x1xf32> to vector<1xf32>
    %161 = vector.shape_cast %160 : vector<1xf32> to vector<1x1xf32>
    %162 = vector.broadcast %161 : vector<1x1xf32> to vector<8x1xf32>
    %163 = arith.cmpf oge, %159, %162 : vector<8x1xf32>
    %c8_i32_56 = arith.constant 8 : i32
    %164 = vector.broadcast %c8_i32_56 : i32 to vector<8x1xi32>
    %165 = arith.select %163, %0, %164 : vector<8x1xi1>, vector<8x1xi32>
    %cst_57 = arith.constant dense<2147483647> : vector<1xi32>
    %166 = vector.multi_reduction <minsi>, %165, %cst_57 [0] : vector<8x1xi32> to vector<1xi32>
    %167 = vector.shape_cast %166 : vector<1xi32> to vector<1x1xi32>
    %168 = tpu.concatenate %104, %113, %122, %131, %140, %149, %158, %167 in 0 : vector<1x1xi32>, vector<1x1xi32>, vector<1x1xi32>, vector<1x1xi32>, vector<1x1xi32>, vector<1x1xi32>, vector<1x1xi32>, vector<1x1xi32> -> vector<8x1xi32>
    %169 = arith.index_cast %c2_i32 : i32 to index
    %c0_58 = arith.constant 0 : index
    %c0_59 = arith.constant 0 : index
    %170 = vector.load %arg6[%169, %c0_58, %c0_59] : memref<4x8x1xi32, #tpu.memory_space<vmem>>, vector<1x8x1xi32>
    %171 = vector.shape_cast %170 : vector<1x8x1xi32> to vector<8x1xi32>
    %172 = vector.shape_cast %168 : vector<8x1xi32> to vector<1x8x1xi32>
    tpu.vector_store %arg6[%169, %c0_58, %c0_59], %172 {strides = array<i32>} : memref<4x8x1xi32, #tpu.memory_space<vmem>>, vector<1x8x1xi32>,
    %173 = tpu.concatenate %98, %107, %116, %125, %134, %143, %152, %161 in 0 : vector<1x1xf32>, vector<1x1xf32>, vector<1x1xf32>, vector<1x1xf32>, vector<1x1xf32>, vector<1x1xf32>, vector<1x1xf32>, vector<1x1xf32> -> vector<8x1xf32>
    %c0_60 = arith.constant 0 : index
    %174 = arith.index_cast %c2_i32 : i32 to index
    %c0_61 = arith.constant 0 : index
    %c0_62 = arith.constant 0 : index
    %175 = vector.load %arg1[%c0_60, %174, %c0_61, %c0_62] : memref<1x4x8x1xf32, #tpu.memory_space<vmem>>, vector<1x1x8x1xf32>
    %176 = vector.shape_cast %175 : vector<1x1x8x1xf32> to vector<8x1xf32>
    %177 = arith.addf %173, %176 : vector<8x1xf32>
    %c3_i32 = arith.constant 3 : i32
    %178 = arith.addf %177, %2 : vector<8x1xf32>
    %cst_63 = arith.constant dense<0xFF800000> : vector<1xf32>
    %179 = vector.multi_reduction <maximumf>, %178, %cst_63 [0] : vector<8x1xf32> to vector<1xf32>
    %180 = vector.shape_cast %179 : vector<1xf32> to vector<1x1xf32>
    %181 = vector.broadcast %180 : vector<1x1xf32> to vector<8x1xf32>
    %182 = arith.cmpf oge, %178, %181 : vector<8x1xf32>
    %c8_i32_64 = arith.constant 8 : i32
    %183 = vector.broadcast %c8_i32_64 : i32 to vector<8x1xi32>
    %184 = arith.select %182, %0, %183 : vector<8x1xi1>, vector<8x1xi32>
    %cst_65 = arith.constant dense<2147483647> : vector<1xi32>
    %185 = vector.multi_reduction <minsi>, %184, %cst_65 [0] : vector<8x1xi32> to vector<1xi32>
    %186 = vector.shape_cast %185 : vector<1xi32> to vector<1x1xi32>
    %187 = arith.addf %177, %3 : vector<8x1xf32>
    %cst_66 = arith.constant dense<0xFF800000> : vector<1xf32>
    %188 = vector.multi_reduction <maximumf>, %187, %cst_66 [0] : vector<8x1xf32> to vector<1xf32>
    %189 = vector.shape_cast %188 : vector<1xf32> to vector<1x1xf32>
    %190 = vector.broadcast %189 : vector<1x1xf32> to vector<8x1xf32>
    %191 = arith.cmpf oge, %187, %190 : vector<8x1xf32>
    %c8_i32_67 = arith.constant 8 : i32
    %192 = vector.broadcast %c8_i32_67 : i32 to vector<8x1xi32>
    %193 = arith.select %191, %0, %192 : vector<8x1xi1>, vector<8x1xi32>
    %cst_68 = arith.constant dense<2147483647> : vector<1xi32>
    %194 = vector.multi_reduction <minsi>, %193, %cst_68 [0] : vector<8x1xi32> to vector<1xi32>
    %195 = vector.shape_cast %194 : vector<1xi32> to vector<1x1xi32>
    %196 = arith.addf %177, %4 : vector<8x1xf32>
    %cst_69 = arith.constant dense<0xFF800000> : vector<1xf32>
    %197 = vector.multi_reduction <maximumf>, %196, %cst_69 [0] : vector<8x1xf32> to vector<1xf32>
    %198 = vector.shape_cast %197 : vector<1xf32> to vector<1x1xf32>
    %199 = vector.broadcast %198 : vector<1x1xf32> to vector<8x1xf32>
    %200 = arith.cmpf oge, %196, %199 : vector<8x1xf32>
    %c8_i32_70 = arith.constant 8 : i32
    %201 = vector.broadcast %c8_i32_70 : i32 to vector<8x1xi32>
    %202 = arith.select %200, %0, %201 : vector<8x1xi1>, vector<8x1xi32>
    %cst_71 = arith.constant dense<2147483647> : vector<1xi32>
    %203 = vector.multi_reduction <minsi>, %202, %cst_71 [0] : vector<8x1xi32> to vector<1xi32>
    %204 = vector.shape_cast %203 : vector<1xi32> to vector<1x1xi32>
    %205 = arith.addf %177, %5 : vector<8x1xf32>
    %cst_72 = arith.constant dense<0xFF800000> : vector<1xf32>
    %206 = vector.multi_reduction <maximumf>, %205, %cst_72 [0] : vector<8x1xf32> to vector<1xf32>
    %207 = vector.shape_cast %206 : vector<1xf32> to vector<1x1xf32>
    %208 = vector.broadcast %207 : vector<1x1xf32> to vector<8x1xf32>
    %209 = arith.cmpf oge, %205, %208 : vector<8x1xf32>
    %c8_i32_73 = arith.constant 8 : i32
    %210 = vector.broadcast %c8_i32_73 : i32 to vector<8x1xi32>
    %211 = arith.select %209, %0, %210 : vector<8x1xi1>, vector<8x1xi32>
    %cst_74 = arith.constant dense<2147483647> : vector<1xi32>
    %212 = vector.multi_reduction <minsi>, %211, %cst_74 [0] : vector<8x1xi32> to vector<1xi32>
    %213 = vector.shape_cast %212 : vector<1xi32> to vector<1x1xi32>
    %214 = arith.addf %177, %6 : vector<8x1xf32>
    %cst_75 = arith.constant dense<0xFF800000> : vector<1xf32>
    %215 = vector.multi_reduction <maximumf>, %214, %cst_75 [0] : vector<8x1xf32> to vector<1xf32>
    %216 = vector.shape_cast %215 : vector<1xf32> to vector<1x1xf32>
    %217 = vector.broadcast %216 : vector<1x1xf32> to vector<8x1xf32>
    %218 = arith.cmpf oge, %214, %217 : vector<8x1xf32>
    %c8_i32_76 = arith.constant 8 : i32
    %219 = vector.broadcast %c8_i32_76 : i32 to vector<8x1xi32>
    %220 = arith.select %218, %0, %219 : vector<8x1xi1>, vector<8x1xi32>
    %cst_77 = arith.constant dense<2147483647> : vector<1xi32>
    %221 = vector.multi_reduction <minsi>, %220, %cst_77 [0] : vector<8x1xi32> to vector<1xi32>
    %222 = vector.shape_cast %221 : vector<1xi32> to vector<1x1xi32>
    %223 = arith.addf %177, %7 : vector<8x1xf32>
    %cst_78 = arith.constant dense<0xFF800000> : vector<1xf32>
    %224 = vector.multi_reduction <maximumf>, %223, %cst_78 [0] : vector<8x1xf32> to vector<1xf32>
    %225 = vector.shape_cast %224 : vector<1xf32> to vector<1x1xf32>
    %226 = vector.broadcast %225 : vector<1x1xf32> to vector<8x1xf32>
    %227 = arith.cmpf oge, %223, %226 : vector<8x1xf32>
    %c8_i32_79 = arith.constant 8 : i32
    %228 = vector.broadcast %c8_i32_79 : i32 to vector<8x1xi32>
    %229 = arith.select %227, %0, %228 : vector<8x1xi1>, vector<8x1xi32>
    %cst_80 = arith.constant dense<2147483647> : vector<1xi32>
    %230 = vector.multi_reduction <minsi>, %229, %cst_80 [0] : vector<8x1xi32> to vector<1xi32>
    %231 = vector.shape_cast %230 : vector<1xi32> to vector<1x1xi32>
    %232 = arith.addf %177, %8 : vector<8x1xf32>
    %cst_81 = arith.constant dense<0xFF800000> : vector<1xf32>
    %233 = vector.multi_reduction <maximumf>, %232, %cst_81 [0] : vector<8x1xf32> to vector<1xf32>
    %234 = vector.shape_cast %233 : vector<1xf32> to vector<1x1xf32>
    %235 = vector.broadcast %234 : vector<1x1xf32> to vector<8x1xf32>
    %236 = arith.cmpf oge, %232, %235 : vector<8x1xf32>
    %c8_i32_82 = arith.constant 8 : i32
    %237 = vector.broadcast %c8_i32_82 : i32 to vector<8x1xi32>
    %238 = arith.select %236, %0, %237 : vector<8x1xi1>, vector<8x1xi32>
    %cst_83 = arith.constant dense<2147483647> : vector<1xi32>
    %239 = vector.multi_reduction <minsi>, %238, %cst_83 [0] : vector<8x1xi32> to vector<1xi32>
    %240 = vector.shape_cast %239 : vector<1xi32> to vector<1x1xi32>
    %241 = arith.addf %177, %9 : vector<8x1xf32>
    %cst_84 = arith.constant dense<0xFF800000> : vector<1xf32>
    %242 = vector.multi_reduction <maximumf>, %241, %cst_84 [0] : vector<8x1xf32> to vector<1xf32>
    %243 = vector.shape_cast %242 : vector<1xf32> to vector<1x1xf32>
    %244 = vector.broadcast %243 : vector<1x1xf32> to vector<8x1xf32>
    %245 = arith.cmpf oge, %241, %244 : vector<8x1xf32>
    %c8_i32_85 = arith.constant 8 : i32
    %246 = vector.broadcast %c8_i32_85 : i32 to vector<8x1xi32>
    %247 = arith.select %245, %0, %246 : vector<8x1xi1>, vector<8x1xi32>
    %cst_86 = arith.constant dense<2147483647> : vector<1xi32>
    %248 = vector.multi_reduction <minsi>, %247, %cst_86 [0] : vector<8x1xi32> to vector<1xi32>
    %249 = vector.shape_cast %248 : vector<1xi32> to vector<1x1xi32>
    %250 = tpu.concatenate %186, %195, %204, %213, %222, %231, %240, %249 in 0 : vector<1x1xi32>, vector<1x1xi32>, vector<1x1xi32>, vector<1x1xi32>, vector<1x1xi32>, vector<1x1xi32>, vector<1x1xi32>, vector<1x1xi32> -> vector<8x1xi32>
    %251 = arith.index_cast %c3_i32 : i32 to index
    %c0_87 = arith.constant 0 : index
    %c0_88 = arith.constant 0 : index
    %252 = vector.load %arg6[%251, %c0_87, %c0_88] : memref<4x8x1xi32, #tpu.memory_space<vmem>>, vector<1x8x1xi32>
    %253 = vector.shape_cast %252 : vector<1x8x1xi32> to vector<8x1xi32>
    %254 = vector.shape_cast %250 : vector<8x1xi32> to vector<1x8x1xi32>
    tpu.vector_store %arg6[%251, %c0_87, %c0_88], %254 {strides = array<i32>} : memref<4x8x1xi32, #tpu.memory_space<vmem>>, vector<1x8x1xi32>,
    %255 = tpu.concatenate %180, %189, %198, %207, %216, %225, %234, %243 in 0 : vector<1x1xf32>, vector<1x1xf32>, vector<1x1xf32>, vector<1x1xf32>, vector<1x1xf32>, vector<1x1xf32>, vector<1x1xf32>, vector<1x1xf32> -> vector<8x1xf32>
    %c0_89 = arith.constant 0 : index
    %256 = arith.index_cast %c3_i32 : i32 to index
    %c0_90 = arith.constant 0 : index
    %c0_91 = arith.constant 0 : index
    %257 = vector.load %arg1[%c0_89, %256, %c0_90, %c0_91] : memref<1x4x8x1xf32, #tpu.memory_space<vmem>>, vector<1x1x8x1xf32>
    %258 = vector.shape_cast %257 : vector<1x1x8x1xf32> to vector<8x1xf32>
    %259 = arith.addf %255, %258 : vector<8x1xf32>
    %c3_i32_92 = arith.constant 3 : i32
    %c0_93 = arith.constant 0 : index
    %c0_94 = arith.constant 0 : index
    %260 = vector.load %arg4[%c0_93, %c0_94] : memref<8x1xf32, #tpu.memory_space<vmem>>, vector<8x1xf32>
    %261 = arith.addf %259, %260 : vector<8x1xf32>
    %cst_95 = arith.constant dense<0xFF800000> : vector<1xf32>
    %262 = vector.multi_reduction <maximumf>, %261, %cst_95 [0] : vector<8x1xf32> to vector<1xf32>
    %263 = vector.shape_cast %262 : vector<1xf32> to vector<1x1xf32>
    %264 = vector.broadcast %263 : vector<1x1xf32> to vector<8x1xf32>
    %265 = arith.cmpf oge, %261, %264 : vector<8x1xf32>
    %c8_i32_96 = arith.constant 8 : i32
    %266 = vector.broadcast %c8_i32_96 : i32 to vector<8x1xi32>
    %267 = arith.select %265, %0, %266 : vector<8x1xi1>, vector<8x1xi32>
    %cst_97 = arith.constant dense<2147483647> : vector<1xi32>
    %268 = vector.multi_reduction <minsi>, %267, %cst_97 [0] : vector<8x1xi32> to vector<1xi32>
    %269 = vector.shape_cast %268 : vector<1xi32> to vector<1x1xi32>
    %c0_98 = arith.constant 0 : index
    %c3 = arith.constant 3 : index
    %c0_99 = arith.constant 0 : index
    %c0_100 = arith.constant 0 : index
    %270 = vector.load %arg5[%c0_98, %c3, %c0_99, %c0_100] : memref<1x4x1x1xi32, #tpu.memory_space<vmem>>, vector<1x1x1x1xi32>
    %271 = vector.shape_cast %270 : vector<1x1x1x1xi32> to vector<1x1xi32>
    %272 = vector.shape_cast %269 : vector<1x1xi32> to vector<1x1x1x1xi32>
    tpu.vector_store %arg5[%c0_98, %c3, %c0_99, %c0_100], %272 {strides = array<i32>} : memref<1x4x1x1xi32, #tpu.memory_space<vmem>>, vector<1x1x1x1xi32>,
    %c0_i32 = arith.constant 0 : i32
    %c2_i32_101 = arith.constant 2 : i32
    %273 = arith.subi %c2_i32_101, %c0_i32 : i32
    %c1_i32_102 = arith.constant 1 : i32
    %274 = arith.addi %273, %c1_i32_102 : i32
    %275 = arith.index_cast %274 : i32 to index
    %c0_103 = arith.constant 0 : index
    %c0_104 = arith.constant 0 : index
    %276 = vector.load %arg6[%275, %c0_103, %c0_104] : memref<4x8x1xi32, #tpu.memory_space<vmem>>, vector<1x8x1xi32>
    %277 = vector.shape_cast %276 : vector<1x8x1xi32> to vector<8x1xi32>
    %278 = vector.broadcast %269 : vector<1x1xi32> to vector<8x1xi32>
    %279 = arith.cmpi eq, %0, %278 : vector<8x1xi32>
    %c0_i32_105 = arith.constant 0 : i32
    %280 = vector.broadcast %c0_i32_105 : i32 to vector<8x1xi32>
    %281 = arith.select %279, %277, %280 : vector<8x1xi1>, vector<8x1xi32>
    %cst_106 = arith.constant dense<0> : vector<1xi32>
    %282 = vector.multi_reduction <add>, %281, %cst_106 [0] : vector<8x1xi32> to vector<1xi32>
    %283 = vector.shape_cast %282 : vector<1xi32> to vector<1x1xi32>
    %c0_107 = arith.constant 0 : index
    %284 = arith.index_cast %273 : i32 to index
    %c0_108 = arith.constant 0 : index
    %c0_109 = arith.constant 0 : index
    %285 = vector.load %arg5[%c0_107, %284, %c0_108, %c0_109] : memref<1x4x1x1xi32, #tpu.memory_space<vmem>>, vector<1x1x1x1xi32>
    %286 = vector.shape_cast %285 : vector<1x1x1x1xi32> to vector<1x1xi32>
    %287 = vector.shape_cast %283 : vector<1x1xi32> to vector<1x1x1x1xi32>
    tpu.vector_store %arg5[%c0_107, %284, %c0_108, %c0_109], %287 {strides = array<i32>} : memref<1x4x1x1xi32, #tpu.memory_space<vmem>>, vector<1x1x1x1xi32>,
    %c1_i32_110 = arith.constant 1 : i32
    %c2_i32_111 = arith.constant 2 : i32
    %288 = arith.subi %c2_i32_111, %c1_i32_110 : i32
    %c1_i32_112 = arith.constant 1 : i32
    %289 = arith.addi %288, %c1_i32_112 : i32
    %290 = arith.index_cast %289 : i32 to index
    %c0_113 = arith.constant 0 : index
    %c0_114 = arith.constant 0 : index
    %291 = vector.load %arg6[%290, %c0_113, %c0_114] : memref<4x8x1xi32, #tpu.memory_space<vmem>>, vector<1x8x1xi32>
    %292 = vector.shape_cast %291 : vector<1x8x1xi32> to vector<8x1xi32>
    %293 = vector.broadcast %283 : vector<1x1xi32> to vector<8x1xi32>
    %294 = arith.cmpi eq, %0, %293 : vector<8x1xi32>
    %c0_i32_115 = arith.constant 0 : i32
    %295 = vector.broadcast %c0_i32_115 : i32 to vector<8x1xi32>
    %296 = arith.select %294, %292, %295 : vector<8x1xi1>, vector<8x1xi32>
    %cst_116 = arith.constant dense<0> : vector<1xi32>
    %297 = vector.multi_reduction <add>, %296, %cst_116 [0] : vector<8x1xi32> to vector<1xi32>
    %298 = vector.shape_cast %297 : vector<1xi32> to vector<1x1xi32>
    %c0_117 = arith.constant 0 : index
    %299 = arith.index_cast %288 : i32 to index
    %c0_118 = arith.constant 0 : index
    %c0_119 = arith.constant 0 : index
    %300 = vector.load %arg5[%c0_117, %299, %c0_118, %c0_119] : memref<1x4x1x1xi32, #tpu.memory_space<vmem>>, vector<1x1x1x1xi32>
    %301 = vector.shape_cast %300 : vector<1x1x1x1xi32> to vector<1x1xi32>
    %302 = vector.shape_cast %298 : vector<1x1xi32> to vector<1x1x1x1xi32>
    tpu.vector_store %arg5[%c0_117, %299, %c0_118, %c0_119], %302 {strides = array<i32>} : memref<1x4x1x1xi32, #tpu.memory_space<vmem>>, vector<1x1x1x1xi32>,
    %c2_i32_120 = arith.constant 2 : i32
    %c2_i32_121 = arith.constant 2 : i32
    %303 = arith.subi %c2_i32_121, %c2_i32_120 : i32
    %c1_i32_122 = arith.constant 1 : i32
    %304 = arith.addi %303, %c1_i32_122 : i32
    %305 = arith.index_cast %304 : i32 to index
    %c0_123 = arith.constant 0 : index
    %c0_124 = arith.constant 0 : index
    %306 = vector.load %arg6[%305, %c0_123, %c0_124] : memref<4x8x1xi32, #tpu.memory_space<vmem>>, vector<1x8x1xi32>
    %307 = vector.shape_cast %306 : vector<1x8x1xi32> to vector<8x1xi32>
    %308 = vector.broadcast %298 : vector<1x1xi32> to vector<8x1xi32>
    %309 = arith.cmpi eq, %0, %308 : vector<8x1xi32>
    %c0_i32_125 = arith.constant 0 : i32
    %310 = vector.broadcast %c0_i32_125 : i32 to vector<8x1xi32>
    %311 = arith.select %309, %307, %310 : vector<8x1xi1>, vector<8x1xi32>
    %cst_126 = arith.constant dense<0> : vector<1xi32>
    %312 = vector.multi_reduction <add>, %311, %cst_126 [0] : vector<8x1xi32> to vector<1xi32>
    %313 = vector.shape_cast %312 : vector<1xi32> to vector<1x1xi32>
    %c0_127 = arith.constant 0 : index
    %314 = arith.index_cast %303 : i32 to index
    %c0_128 = arith.constant 0 : index
    %c0_129 = arith.constant 0 : index
    %315 = vector.load %arg5[%c0_127, %314, %c0_128, %c0_129] : memref<1x4x1x1xi32, #tpu.memory_space<vmem>>, vector<1x1x1x1xi32>
    %316 = vector.shape_cast %315 : vector<1x1x1x1xi32> to vector<1x1xi32>
    %317 = vector.shape_cast %313 : vector<1x1xi32> to vector<1x1x1x1xi32>
    tpu.vector_store %arg5[%c0_127, %314, %c0_128, %c0_129], %317 {strides = array<i32>} : memref<1x4x1x1xi32, #tpu.memory_space<vmem>>, vector<1x1x1x1xi32>,
    %c3_i32_130 = arith.constant 3 : i32
    return
  }
  func.func @transform_0(%arg0: i32) -> (i32, i32, i32, i32) {
    %c0_i32 = arith.constant 0 : i32
    %c0_i32_0 = arith.constant 0 : i32
    %c0_i32_1 = arith.constant 0 : i32
    %c0_i32_2 = arith.constant 0 : i32
    return %arg0, %c0_i32, %c0_i32_0, %c0_i32_1 : i32, i32, i32, i32
  }
  func.func @transform_1(%arg0: i32) -> (i32, i32) {
    %c0_i32 = arith.constant 0 : i32
    %c0_i32_0 = arith.constant 0 : i32
    %c0_i32_1 = arith.constant 0 : i32
    return %c0_i32, %c0_i32_0 : i32, i32
  }
  func.func @transform_2(%arg0: i32) -> (i32, i32) {
    %c0_i32 = arith.constant 0 : i32
    %c0_i32_0 = arith.constant 0 : i32
    %c0_i32_1 = arith.constant 0 : i32
    return %c0_i32, %c0_i32_0 : i32, i32
  }
  func.func @transform_3(%arg0: i32) -> (i32, i32) {
    %c0_i32 = arith.constant 0 : i32
    %c0_i32_0 = arith.constant 0 : i32
    %c0_i32_1 = arith.constant 0 : i32
    return %c0_i32, %c0_i32_0 : i32, i32
  }
  func.func @transform_4(%arg0: i32) -> (i32, i32, i32, i32) {
    %c0_i32 = arith.constant 0 : i32
    %c0_i32_0 = arith.constant 0 : i32
    %c0_i32_1 = arith.constant 0 : i32
    %c0_i32_2 = arith.constant 0 : i32
    return %arg0, %c0_i32, %c0_i32_0, %c0_i32_1 : i32, i32, i32, i32
  }
}

</mosaic_0001>

<bundles_post_ra>
// kernel: tpu_custom_call.1
= control target key start
LH: loop header
LB: loop body
LE: loop exit
PB: predicated region body
PF: predicated region fallthrough
CT: control target
= control target key end

     0   :  { %s953_s15 = smov 0   ;;  %s1337_s0 = inlined_call_operand.vmem [shape: f32[2,4,8,1], index: 0, kind: input, shape index: {}]   ;;  %s1338_s1 = inlined_call_operand.vmem [shape: f32[8,8], index: 1, kind: input, shape index: {}]   ;;  %s1339_s2 = inlined_call_operand.vmem [shape: f32[8,1], index: 2, kind: input, shape index: {}]   ;;  %s1340_s3 = inlined_call_operand.vmem [shape: f32[8,1], index: 3, kind: input, shape index: {}]   ;;  %s1341_s4 = inlined_call_operand.vmem [shape: s32[2,4,1,1], index: 4, kind: output, shape index: {}]  }
   0x1 LB: > { %s881_s16 = sadd.s32 4294967295, %s919_s15   ;;  %p885_p0 = scmp.ge.s32.totalorder %s919_s15, 1  ;;  %s919_s15 = sphi %s953_s15, %s14_s15  }
   0x2   : > { %p162_p1 = scmp.lt.s32.totalorder %s919_s15, 3 }
   0x4   : > { %p163_p2 = pnand %p885_p0, %p162_p1 }
   0x5   : > { %v964_v0 = vld [vmem:[%s1338_s1] sm:$0xff] (!%p163_p2)  ;;  %s921_s19 = smov (!%p163_p2), 125   ;;  %s922_s20 = smov (!%p163_p2), 127   ;;  %vm203_vm0 = vcmask (!%p163_p2), 7168   ;;  %v196_v11 = vlaneseq (!%p163_p2)  ;;  %vm385_vm4 = vcmask (!%p163_p2), 1040384   ;;  %vm387_vm5 = vcmask (!%p163_p2), 1041408  }
   0x6   : > { %166 = sbr.rel (%p163_p2) target bundleno = 330 (0x14a), region = 36  ;;  %270 = vrot.lane.b32.xlu1 (!%p163_p2), %v964_v0, %s921_s19  ;;  %224 = vrot.lane.b32.xlu0 (!%p163_p2), %v964_v0, %s922_s20  ;;  %s923_s21 = smov (!%p163_p2), 124   ;;  %v200_v1 = vld [vmem:[%s1339_s2] sm:$0xff] (!%p163_p2)  ;;  %vm389_vm8 = vcmask (!%p163_p2), 1042432   ;;  %vm391_vm10 = vcmask (!%p163_p2), 1043456  }
   0x7   : > { %s924_s22 = smov (!%p163_p2), 126   ;;  %s925_s23 = smov (!%p163_p2), 122   ;;  %v992_v13 = vshrl.u32 (!%p163_p2), %v196_v11, 7 }
   0x8   : > { %s926_s24 = smov (!%p163_p2), 123   ;;  %s927_s25 = smov (!%p163_p2), 121  }
   0x9   : > { %p187_p3 = scmp.lt.s32.totalorder (!%p163_p2), %s881_s16, 1 }
   0xa   : > { %293 = vrot.lane.b32.xlu1 (!%p163_p2), %v964_v0, %s923_s21  ;;  %247 = vrot.lane.b32.xlu0 (!%p163_p2), %v964_v0, %s924_s22 }
   0xd   : > { %s1348_s16 = smov (!%p187_p3, %s881_s16), 1 }
   0xe   : > { %339 = vrot.lane.b32.xlu1 %v964_v0, %s925_s23  ;;  %316 = vrot.lane.b32.xlu0 %v964_v0, %s926_s24  ;;  %s897_s26 = sshll.u32 %s1348_s16, 5  ;;  %s888_s8 = sshll.u32 %s1348_s16, 2 }
   0xf   : > { %s979_s29 = scalar_lea.vmem %s1337_s0, %s897_s26  ;;  %s1318_s11 = scalar_lea.vmem %s1341_s4, %s888_s8 }
  0x10   : > { %v199_v2 = vld [vmem:[%s979_s29] sm:$0xff] }
  0x11   : > { %v985_v3 = vadd.f32 %v200_v1, %v199_v2 }
  0x12   : > { %362 = vrot.lane.b32.xlu0 %v964_v0, %s927_s25 }
  0x13   : > { %v202_v4 = vadd.f32 %v985_v3, %v964_v0 }
  0x15   : > { %v204_v5 = vsel %vm203_vm0, %v202_v4, -inf }
  0x16   : > { %v205_v6 = vrot.slane %v204_v5, 4 }
  0x18   : > { %v206_v7 = vmax.f32 %v204_v5, %v205_v6 }
  0x1a   : > { %v207_v8 = vrot.slane %v206_v7, 2 }
  0x1c   : > { %v208_v9 = vmax.f32 %v206_v7, %v207_v8 }
  0x1e   : > { %v209_v10 = vrot.slane %v208_v9, 1 }
  0x20   : > { %v990_v12 = vmax.f32 %v208_v9, %v209_v10 }
  0x22   : > { %vm211_vm1 = vcmp.ge.f32.partialorder %v202_v4, %v990_v12 }
  0x23   : > { %v212_v14 = vsel %vm211_vm1, %v992_v13, 8 }
  0x24   : > { %v213_v15 = vsel %vm203_vm0, %v212_v14, 2147483647 }
  0x25   : > { %v214_v16 = vrot.slane %v213_v15, 4 }
  0x27   : > { %vm215_vm2 = vcmp.lt.s32.totalorder %v213_v15, %v214_v16 }
  0x28   : > { %v216_v21 = vsel %vm215_vm2, %v213_v15, %v214_v16 }
  0x29   : > { %v217_v28 = vrot.slane %v216_v21, 2 }
  0x2b   : > { %vm218_vm3 = vcmp.lt.s32.totalorder %v216_v21, %v217_v28 }
  0x2c   : > { %v1041_v54 = vsel %vm218_vm3, %v216_v21, %v217_v28 }
  0x2d   : > { %v220_v1 = vrot.slane %v1041_v54, 1 }
  0x2f   : > { %vm221_vm2 = vcmp.lt.s32.totalorder %v1041_v54, %v220_v1 }
  0x78   : > { %v997_v17 = vpop.permute.xlu1 %270  ;;  %v999_v18 = vpop.permute.xlu0 %224 }
  0x79   : > { %v273_v19 = vadd.f32 %v997_v17, %v985_v3  ;;  %v227_v20 = vadd.f32 %v999_v18, %v985_v3 }
  0x7b   : > { %v274_v22 = vsel %vm203_vm0, %v273_v19, -inf  ;;  %v228_v23 = vsel %vm203_vm0, %v227_v20, -inf }
  0x7c   : > { %v275_v24 = vrot.slane %v274_v22, 4  ;;  %v229_v25 = vrot.slane %v228_v23, 4  ;;  %v1007_v26 = vpop.permute.xlu1 %293  ;;  %v1009_v27 = vpop.permute.xlu0 %247 }
  0x7d   : > { %v1013_v29 = vadd.f32 %v1007_v26, %v985_v3  ;;  %v1017_v30 = vadd.f32 %v1009_v27, %v985_v3 }
  0x7e   : > { %v276_v31 = vmax.f32 %v274_v22, %v275_v24  ;;  %v230_v32 = vmax.f32 %v228_v23, %v229_v25 }
  0x7f   : > { %v297_v33 = vsel %vm203_vm0, %v1013_v29, -inf  ;;  %v251_v34 = vsel %vm203_vm0, %v1017_v30, -inf }
  0x80   : > { %v277_v35 = vrot.slane %v276_v31, 2  ;;  %v231_v36 = vrot.slane %v230_v32, 2  ;;  %v298_v37 = vrot.slane %v297_v33, 4  ;;  %v252_v38 = vrot.slane %v251_v34, 4  ;;  %v1023_v39 = vpop.permute.xlu1 %339  ;;  %v1025_v40 = vpop.permute.xlu0 %316 }
  0x81   : > { %v1029_v41 = vadd.f32 %v1023_v39, %v985_v3  ;;  %v1033_v42 = vadd.f32 %v1025_v40, %v985_v3 }
  0x82   : > { %v278_v43 = vmax.f32 %v276_v31, %v277_v35  ;;  %v232_v44 = vmax.f32 %v230_v32, %v231_v36  ;;  %v299_v45 = vmax.f32 %v297_v33, %v298_v37  ;;  %v253_v46 = vmax.f32 %v251_v34, %v252_v38 }
  0x83   : > { %v343_v47 = vsel %vm203_vm0, %v1029_v41, -inf  ;;  %v320_v48 = vsel %vm203_vm0, %v1033_v42, -inf }
  0x84   : > { %v279_v49 = vrot.slane %v278_v43, 1  ;;  %v233_v50 = vrot.slane %v232_v44, 1  ;;  %v300_v51 = vrot.slane %v299_v45, 2  ;;  %v254_v52 = vrot.slane %v253_v46, 2  ;;  %v1039_v53 = vpop.permute.xlu0 %362 }
  0x85   : > { %v344_v55 = vrot.slane %v343_v47, 4  ;;  %v321_v56 = vrot.slane %v320_v48, 4  ;;  %v1045_v63 = vadd.f32 %v1039_v53, %v985_v3 }
  0x86   : > { %v280_v57 = vmax.f32 %v278_v43, %v279_v49  ;;  %v234_v58 = vmax.f32 %v232_v44, %v233_v50  ;;  %v301_v59 = vmax.f32 %v299_v45, %v300_v51  ;;  %v255_v60 = vmax.f32 %v253_v46, %v254_v52 }
  0x87   : > { %v345_v61 = vmax.f32 %v343_v47, %v344_v55  ;;  %v322_v62 = vmax.f32 %v320_v48, %v321_v56  ;;  %v366_v16 = vsel %vm203_vm0, %v1045_v63, -inf  ;;  %v222_v52 = vsel %vm221_vm2, %v1041_v54, %v220_v1 }
  0x88   : > { %vm281_vm6 = vcmp.ge.f32.partialorder %v273_v19, %v280_v57  ;;  %vm235_vm7 = vcmp.ge.f32.partialorder %v227_v20, %v234_v58  ;;  %v302_v2 = vrot.slane %v301_v59, 1  ;;  %v256_v6 = vrot.slane %v255_v60, 1 }
  0x89   : > { %v282_v4 = vsel %vm281_vm6, %v992_v13, 8  ;;  %v236_v5 = vsel %vm235_vm7, %v992_v13, 8  ;;  %v346_v7 = vrot.slane %v345_v61, 2  ;;  %v323_v11 = vrot.slane %v322_v62, 2 }
  0x8a   : > { %v283_v8 = vsel %vm203_vm0, %v282_v4, 2147483647  ;;  %v237_v9 = vsel %vm203_vm0, %v236_v5, 2147483647  ;;  %v303_v10 = vmax.f32 %v301_v59, %v302_v2  ;;  %v257_v15 = vmax.f32 %v255_v60, %v256_v6 }
  0x8b   : > { %v284_v3 = vrot.slane %v283_v8, 4  ;;  %v238_v14 = vrot.slane %v237_v9, 4  ;;  %v401_v19 = vsel %vm385_vm4, %v990_v12, %v234_v58  ;;  %v347_v20 = vmax.f32 %v345_v61, %v346_v7 }
  0x8c   : > { %vm304_vm9 = vcmp.ge.f32.partialorder %v1013_v29, %v303_v10  ;;  %v324_v21 = vmax.f32 %v322_v62, %v323_v11  ;;  %vm258_vm13 = vcmp.ge.f32.partialorder %v1017_v30, %v257_v15  ;;  %v402_v34 = vsel %vm387_vm5, %v401_v19, %v257_v15 }
  0x8d   : > { %vm285_vm11 = vcmp.lt.s32.totalorder %v283_v8, %v284_v3  ;;  %vm239_vm12 = vcmp.lt.s32.totalorder %v237_v9, %v238_v14  ;;  %v305_v22 = vsel %vm304_vm9, %v992_v13, 8  ;;  %v259_v28 = vsel %vm258_vm13, %v992_v13, 8 }
  0x8e   : > { %v286_v23 = vsel %vm285_vm11, %v283_v8, %v284_v3  ;;  %v240_v24 = vsel %vm239_vm12, %v237_v9, %v238_v14  ;;  %v306_v25 = vsel %vm203_vm0, %v305_v22, 2147483647  ;;  %v260_v29 = vsel %vm203_vm0, %v259_v28, 2147483647 }
  0x8f   : > { %v287_v31 = vrot.slane %v286_v23, 2  ;;  %v241_v32 = vrot.slane %v240_v24, 2  ;;  %v307_v12 = vrot.slane %v306_v25, 4  ;;  %v261_v33 = vrot.slane %v260_v29, 4 }
  0x90   : > { %v348_v35 = vrot.slane %v347_v20, 1  ;;  %v325_v36 = vrot.slane %v324_v21, 1  ;;  %v367_v30 = vrot.slane %v366_v16, 4  ;;  %v403_v46 = vsel %vm389_vm8, %v402_v34, %v280_v57 }
  0x91   : > { %vm288_vm14 = vcmp.lt.s32.totalorder %v286_v23, %v287_v31  ;;  %vm242_vm15 = vcmp.lt.s32.totalorder %v240_v24, %v241_v32  ;;  %vm308_vm1 = vcmp.lt.s32.totalorder %v306_v25, %v307_v12  ;;  %vm262_vm3 = vcmp.lt.s32.totalorder %v260_v29, %v261_v33 }
  0x92   : > { %v243_v37 = vsel %vm242_vm15, %v240_v24, %v241_v32  ;;  %v309_v38 = vsel %vm308_vm1, %v306_v25, %v307_v12  ;;  %v263_v45 = vsel %vm262_vm3, %v260_v29, %v261_v33  ;;  %v289_v47 = vsel %vm288_vm14, %v286_v23, %v287_v31 }
  0x93   : > { %v244_v43 = vrot.slane %v243_v37, 1  ;;  %v310_v44 = vrot.slane %v309_v38, 2  ;;  %v264_v48 = vrot.slane %v263_v45, 2  ;;  %v349_v49 = vmax.f32 %v347_v20, %v348_v35  ;;  %v889_v20 = vld [vmem:[%s979_s29 + $0x8] sm:$0xff] }
  0x94   : > { %v326_v50 = vmax.f32 %v324_v21, %v325_v36  ;;  %vm393_vm7 = vcmask 1044480   ;;  %v368_v51 = vmax.f32 %v366_v16, %v367_v30  ;;  %v290_v56 = vrot.slane %v289_v47, 1 }
  0x95   : > { %vm311_vm6 = vcmp.lt.s32.totalorder %v309_v38, %v310_v44  ;;  %vm245_vm9 = vcmp.lt.s32.totalorder %v243_v37, %v244_v43  ;;  %vm265_vm11 = vcmp.lt.s32.totalorder %v263_v45, %v264_v48  ;;  %vm350_vm12 = vcmp.ge.f32.partialorder %v1029_v41, %v349_v49 }
  0x96   : > { %v312_v55 = vsel %vm311_vm6, %v309_v38, %v310_v44  ;;  %v266_v58 = vsel %vm265_vm11, %v263_v45, %v264_v48  ;;  %v404_v59 = vsel %vm391_vm10, %v403_v46, %v303_v10  ;;  %v351_v61 = vsel %vm350_vm12, %v992_v13, 8 }
  0x97   : > { %v313_v60 = vrot.slane %v312_v55, 1  ;;  %v267_v57 = vrot.slane %v266_v58, 1  ;;  %vm327_vm13 = vcmp.ge.f32.partialorder %v1033_v42, %v326_v50  ;;  %v246_v62 = vsel %vm245_vm9, %v243_v37, %v244_v43 }
  0x98   : > { %v352_v2 = vsel %vm203_vm0, %v351_v61, 2147483647  ;;  %v328_v54 = vsel %vm327_vm13, %v992_v13, 8  ;;  %v369_v1 = vrot.slane %v368_v51, 2  ;;  %vm395_vm15 = vcmask 1045504  }
  0x99   : > { %vm268_vm14 = vcmp.lt.s32.totalorder %v266_v58, %v267_v57  ;;  %v353_v4 = vrot.slane %v352_v2, 4  ;;  %v329_v5 = vsel %vm203_vm0, %v328_v54, 2147483647  ;;  %vm291_vm1 = vcmp.lt.s32.totalorder %v289_v47, %v290_v56 }
  0x9a   : > { %v269_v41 = vsel %vm268_vm14, %v266_v58, %v267_v57  ;;  %v330_v6 = vrot.slane %v329_v5, 4  ;;  %v370_v7 = vmax.f32 %v368_v51, %v369_v1  ;;  %v386_v8 = vsel %vm385_vm4, %v222_v52, %v246_v62 }
  0x9b   : > { %vm314_vm2 = vcmp.lt.s32.totalorder %v312_v55, %v313_v60  ;;  %vm354_vm3 = vcmp.lt.s32.totalorder %v352_v2, %v353_v4  ;;  %v405_v42 = vsel %vm393_vm7, %v404_v59, %v326_v50  ;;  %v388_v9 = vsel %vm387_vm5, %v386_v8, %v269_v41 }
  0x9c   : > { %v355_v10 = vsel %vm354_vm3, %v352_v2, %v353_v4  ;;  %vm331_vm6 = vcmp.lt.s32.totalorder %v329_v5, %v330_v6  ;;  %v371_v11 = vrot.slane %v370_v7, 1  ;;  %vm1342_vm9 = vcmask 1046528  }
  0x9d   : > { %v356_v3 = vrot.slane %v355_v10, 2  ;;  %v332_v14 = vsel %vm331_vm6, %v329_v5, %v330_v6  ;;  %v292_v15 = vsel %vm291_vm1, %v289_v47, %v290_v56  ;;  %v315_v21 = vsel %vm314_vm2, %v312_v55, %v313_v60 }
  0x9e   : > { %v333_v16 = vrot.slane %v332_v14, 2  ;;  %v372_v19 = vmax.f32 %v370_v7, %v371_v11  ;;  %v390_v22 = vsel %vm389_vm8, %v388_v9, %v292_v15  ;;  %v406_v23 = vsel %vm395_vm15, %v405_v42, %v349_v49 }
  0x9f   : > { %vm357_vm11 = vcmp.lt.s32.totalorder %v355_v10, %v356_v3  ;;  %v392_v33 = vsel %vm391_vm10, %v390_v22, %v315_v21 }
  0xa0   : > { %v358_v24 = vsel %vm357_vm11, %v355_v10, %v356_v3  ;;  %vm334_vm12 = vcmp.lt.s32.totalorder %v332_v14, %v333_v16  ;;  %vm373_vm13 = vcmp.ge.f32.partialorder %v1045_v63, %v372_v19  ;;  %v407_v25 = vsel %vm1342_vm9, %v406_v23, %v372_v19 }
  0xa1   : > { %v359_v28 = vrot.slane %v358_v24, 1  ;;  %v335_v31 = vsel %vm334_vm12, %v332_v14, %v333_v16  ;;  %v374_v32 = vsel %vm373_vm13, %v992_v13, 8  ;;  %v1082_v12 = vadd.f32 %v889_v20, %v407_v25 }
  0xa2   : > { %v336_v29 = vrot.slane %v335_v31, 1  ;;  %v375_v34 = vsel %vm203_vm0, %v374_v32, 2147483647 }
  0xa3   : > { %vm360_vm14 = vcmp.lt.s32.totalorder %v358_v24, %v359_v28  ;;  %v376_v35 = vrot.slane %v375_v34, 4  ;;  %v1088_v36 = vadd.f32 %v1082_v12, %v964_v0  ;;  %v1092_v63 = vadd.f32 %v1082_v12, %v999_v18 }
  0xa4   : > { %v361_v30 = vsel %vm360_vm14, %v358_v24, %v359_v28  ;;  %vm337_vm1 = vcmp.lt.s32.totalorder %v335_v31, %v336_v29  ;;  %v1096_v37 = vadd.f32 %v1082_v12, %v1009_v27  ;;  %v1100_v38 = vadd.f32 %v1082_v12, %v997_v17 }
  0xa5   : > { %v338_v43 = vsel %vm337_vm1, %v335_v31, %v336_v29  ;;  %vm377_vm2 = vcmp.lt.s32.totalorder %v375_v34, %v376_v35  ;;  %v412_v44 = vsel %vm203_vm0, %v1088_v36, -inf  ;;  %v432_v45 = vsel %vm203_vm0, %v1092_v63, -inf }
  0xa6   : > { %v394_v46 = vsel %vm393_vm7, %v392_v33, %v338_v43  ;;  %v378_v47 = vsel %vm377_vm2, %v375_v34, %v376_v35  ;;  %v413_v48 = vrot.slane %v412_v44, 4  ;;  %v433_v49 = vrot.slane %v432_v45, 4 }
  0xa7   : > { %v379_v50 = vrot.slane %v378_v47, 2  ;;  %v396_v51 = vsel %vm395_vm15, %v394_v46, %v361_v30  ;;  %v452_v52 = vsel %vm203_vm0, %v1096_v37, -inf  ;;  %v472_v55 = vsel %vm203_vm0, %v1100_v38, -inf }
  0xa8   : > { %v414_v56 = vmax.f32 %v412_v44, %v413_v48  ;;  %v434_v58 = vmax.f32 %v432_v45, %v433_v49  ;;  %v453_v59 = vrot.slane %v452_v52, 4  ;;  %v473_v60 = vrot.slane %v472_v55, 4 }
  0xa9   : > { %vm380_vm3 = vcmp.lt.s32.totalorder %v378_v47, %v379_v50  ;;  %v1114_v57 = vadd.f32 %v1082_v12, %v1007_v26  ;;  %v1118_v61 = vadd.f32 %v1082_v12, %v1025_v40  ;;  %v1122_v62 = vadd.f32 %v1082_v12, %v1023_v39 }
  0xaa   : > { %v381_v2 = vsel %vm380_vm3, %v378_v47, %v379_v50  ;;  %v415_v54 = vrot.slane %v414_v56, 2  ;;  %v435_v1 = vrot.slane %v434_v58, 2  ;;  %v454_v4 = vmax.f32 %v452_v52, %v453_v59 }
  0xab   : > { %v382_v5 = vrot.slane %v381_v2, 1  ;;  %v474_v41 = vmax.f32 %v472_v55, %v473_v60  ;;  %v492_v6 = vsel %vm203_vm0, %v1114_v57, -inf  ;;  %v512_v7 = vsel %vm203_vm0, %v1118_v61, -inf }
  0xac   : > { %v416_v8 = vmax.f32 %v414_v56, %v415_v54  ;;  %v436_v42 = vmax.f32 %v434_v58, %v435_v1  ;;  %v455_v9 = vrot.slane %v454_v4, 2  ;;  %v493_v10 = vrot.slane %v492_v6, 4 }
  0xad   : > { %vm383_vm6 = vcmp.lt.s32.totalorder %v381_v2, %v382_v5  ;;  %v475_v11 = vrot.slane %v474_v41, 2  ;;  %v513_v3 = vrot.slane %v512_v7, 4  ;;  %v532_v14 = vsel %vm203_vm0, %v1122_v62, -inf }
  0xae   : > { %v384_v15 = vsel %vm383_vm6, %v381_v2, %v382_v5  ;;  %v417_v16 = vrot.slane %v416_v8, 1  ;;  %v437_v19 = vrot.slane %v436_v42, 1  ;;  %v456_v20 = vmax.f32 %v454_v4, %v455_v9 }
  0xaf   : > { %v398_v21 = vsel %vm1342_vm9, %v396_v51, %v384_v15  ;;  %v476_v22 = vmax.f32 %v474_v41, %v475_v11  ;;  %v494_v23 = vmax.f32 %v492_v6, %v493_v10  ;;  %v514_v24 = vmax.f32 %v512_v7, %v513_v3 }
  0xb0   : > { %400 = vst.msk [vmem:[#allocation2 + $0x8] sm:$0xff] %vm203_vm0, %v398_v21  ;;  %v1132_v25 = vmax.f32 %v416_v8, %v417_v16  ;;  %v1134_v28 = vmax.f32 %v436_v42, %v437_v19  ;;  %v457_v31 = vrot.slane %v456_v20, 1  ;;  %v533_v32 = vrot.slane %v532_v14, 4 }
  0xb1   : > { %v477_v29 = vrot.slane %v476_v22, 1  ;;  %v495_v33 = vrot.slane %v494_v23, 2  ;;  %v515_v34 = vrot.slane %v514_v24, 2  ;;  %v551_v19 = vadd.f32 %v1082_v12, %v1039_v53 }
  0xb2   : > { %vm419_vm11 = vcmp.ge.f32.partialorder %v1088_v36, %v1132_v25  ;;  %vm439_vm12 = vcmp.ge.f32.partialorder %v1092_v63, %v1134_v28  ;;  %v1140_v35 = vmax.f32 %v456_v20, %v457_v31  ;;  %v534_v30 = vmax.f32 %v532_v14, %v533_v32 }
  0xb3   : > { %v420_v43 = vsel %vm419_vm11, %v992_v13, 8  ;;  %v440_v44 = vsel %vm439_vm12, %v992_v13, 8  ;;  %v1144_v45 = vmax.f32 %v476_v22, %v477_v29  ;;  %v496_v46 = vmax.f32 %v494_v23, %v495_v33 }
  0xb4   : > { %v421_v47 = vsel %vm203_vm0, %v420_v43, 2147483647  ;;  %v441_v48 = vsel %vm203_vm0, %v440_v44, 2147483647  ;;  %vm459_vm13 = vcmp.ge.f32.partialorder %v1096_v37, %v1140_v35  ;;  %v516_v36 = vmax.f32 %v514_v24, %v515_v34 }
  0xb5   : > { %v422_v49 = vrot.slane %v421_v47, 4  ;;  %v442_v63 = vrot.slane %v441_v48, 4  ;;  %v460_v50 = vsel %vm459_vm13, %v992_v13, 8  ;;  %vm479_vm14 = vcmp.ge.f32.partialorder %v1100_v38, %v1144_v45 }
  0xb6   : > { %v461_v51 = vsel %vm203_vm0, %v460_v50, 2147483647  ;;  %v480_v52 = vsel %vm479_vm14, %v992_v13, 8  ;;  %v497_v55 = vrot.slane %v496_v46, 1  ;;  %v517_v56 = vrot.slane %v516_v36, 1 }
  0xb7   : > { %vm423_vm1 = vcmp.lt.s32.totalorder %v421_v47, %v422_v49  ;;  %vm443_vm2 = vcmp.lt.s32.totalorder %v441_v48, %v442_v63  ;;  %v462_v58 = vrot.slane %v461_v51, 4  ;;  %v481_v59 = vsel %vm203_vm0, %v480_v52, 2147483647 }
  0xb8   : > { %v424_v37 = vsel %vm423_vm1, %v421_v47, %v422_v49  ;;  %v444_v60 = vsel %vm443_vm2, %v441_v48, %v442_v63  ;;  %v482_v2 = vrot.slane %v481_v59, 4  ;;  %v1156_v54 = vmax.f32 %v496_v46, %v497_v55 }
  0xb9   : > { %v425_v1 = vrot.slane %v424_v37, 2  ;;  %v445_v4 = vrot.slane %v444_v60, 2  ;;  %vm463_vm3 = vcmp.lt.s32.totalorder %v461_v51, %v462_v58  ;;  %v1158_v38 = vmax.f32 %v516_v36, %v517_v56 }
  0xba   : > { %v464_v5 = vsel %vm463_vm3, %v461_v51, %v462_v58  ;;  %vm483_vm6 = vcmp.lt.s32.totalorder %v481_v59, %v482_v2  ;;  %vm499_vm11 = vcmp.ge.f32.partialorder %v1114_v57, %v1156_v54  ;;  %v535_v41 = vrot.slane %v534_v30, 2 }
  0xbb   : > { %vm426_vm12 = vcmp.lt.s32.totalorder %v424_v37, %v425_v1  ;;  %vm446_vm13 = vcmp.lt.s32.totalorder %v444_v60, %v445_v4  ;;  %v465_v6 = vrot.slane %v464_v5, 2  ;;  %v484_v7 = vsel %vm483_vm6, %v481_v59, %v482_v2 }
  0xbc   : > { %v427_v8 = vsel %vm426_vm12, %v424_v37, %v425_v1  ;;  %v447_v42 = vsel %vm446_vm13, %v444_v60, %v445_v4  ;;  %v485_v9 = vrot.slane %v484_v7, 2  ;;  %v500_v10 = vsel %vm499_vm11, %v992_v13, 8 }
  0xbd   : > { %v428_v11 = vrot.slane %v427_v8, 1  ;;  %v448_v3 = vrot.slane %v447_v42, 1  ;;  %vm466_vm14 = vcmp.lt.s32.totalorder %v464_v5, %v465_v6  ;;  %v501_v14 = vsel %vm203_vm0, %v500_v10, 2147483647 }
  0xbe   : > { %v467_v15 = vsel %vm466_vm14, %v464_v5, %v465_v6  ;;  %vm486_vm1 = vcmp.lt.s32.totalorder %v484_v7, %v485_v9  ;;  %v502_v16 = vrot.slane %v501_v14, 4  ;;  %vm519_vm2 = vcmp.ge.f32.partialorder %v1118_v61, %v1158_v38 }
  0xbf   : > { %vm429_vm3 = vcmp.lt.s32.totalorder %v427_v8, %v428_v11  ;;  %vm449_vm9 = vcmp.lt.s32.totalorder %v447_v42, %v448_v3  ;;  %v468_v57 = vrot.slane %v467_v15, 1  ;;  %v487_v20 = vsel %vm486_vm1, %v484_v7, %v485_v9  ;;  %v890_v7 = vld [vmem:[%s979_s29 + $0x10] sm:$0xff] }
  0xc0   : > { %vm503_vm6 = vcmp.lt.s32.totalorder %v501_v14, %v502_v16  ;;  %v520_v22 = vsel %vm519_vm2, %v992_v13, 8  ;;  %v536_v23 = vmax.f32 %v534_v30, %v535_v41  ;;  %v430_v24 = vsel %vm429_vm3, %v427_v8, %v428_v11 }
  0xc1   : > { %v504_v21 = vsel %vm503_vm6, %v501_v14, %v502_v16  ;;  %v450_v31 = vsel %vm449_vm9, %v447_v42, %v448_v3  ;;  %v521_v29 = vsel %vm203_vm0, %v520_v22, 2147483647  ;;  %vm469_vm11 = vcmp.lt.s32.totalorder %v467_v15, %v468_v57 }
  0xc2   : > { %v505_v32 = vrot.slane %v504_v21, 2  ;;  %v522_v33 = vrot.slane %v521_v29, 4  ;;  %v537_v61 = vrot.slane %v536_v23, 1  ;;  %v552_v34 = vsel %vm203_vm0, %v551_v19, -inf }
  0xc3   : > { %v488_v43 = vrot.slane %v487_v20, 1  ;;  %v553_v44 = vrot.slane %v552_v34, 4  ;;  %v580_v12 = vsel %vm385_vm4, %v1132_v25, %v1134_v28  ;;  %v470_v47 = vsel %vm469_vm11, %v467_v15, %v468_v57 }
  0xc4   : > { %vm506_vm12 = vcmp.lt.s32.totalorder %v504_v21, %v505_v32  ;;  %vm523_vm13 = vcmp.lt.s32.totalorder %v521_v29, %v522_v33  ;;  %v538_v30 = vmax.f32 %v536_v23, %v537_v61  ;;  %v571_v49 = vsel %vm385_vm4, %v430_v24, %v450_v31 }
  0xc5   : > { %v507_v46 = vsel %vm506_vm12, %v504_v21, %v505_v32  ;;  %v524_v48 = vsel %vm523_vm13, %v521_v29, %v522_v33  ;;  %v554_v36 = vmax.f32 %v552_v34, %v553_v44  ;;  %v581_v51 = vsel %vm387_vm5, %v580_v12, %v1140_v35 }
  0xc6   : > { %v508_v63 = vrot.slane %v507_v46, 1  ;;  %v525_v50 = vrot.slane %v524_v48, 2  ;;  %vm539_vm9 = vcmp.ge.f32.partialorder %v1122_v62, %v538_v30  ;;  %vm489_vm14 = vcmp.lt.s32.totalorder %v487_v20, %v488_v43 }
  0xc7   : > { %v540_v52 = vsel %vm539_vm9, %v992_v13, 8  ;;  %v555_v55 = vrot.slane %v554_v36, 2  ;;  %v582_v25 = vsel %vm389_vm8, %v581_v51, %v1144_v45  ;;  %v572_v56 = vsel %vm387_vm5, %v571_v49, %v470_v47 }
  0xc8   : > { %vm526_vm1 = vcmp.lt.s32.totalorder %v524_v48, %v525_v50  ;;  %v541_v28 = vsel %vm203_vm0, %v540_v52, 2147483647  ;;  %v583_v58 = vsel %vm391_vm10, %v582_v25, %v1156_v54  ;;  %v490_v35 = vsel %vm489_vm14, %v487_v20, %v488_v43 }
  0xc9   : > { %v527_v59 = vsel %vm526_vm1, %v524_v48, %v525_v50  ;;  %v542_v62 = vrot.slane %v541_v28, 4  ;;  %v556_v37 = vmax.f32 %v554_v36, %v555_v55  ;;  %vm509_vm2 = vcmp.lt.s32.totalorder %v507_v46, %v508_v63 }
  0xca   : > { %v528_v60 = vrot.slane %v527_v59, 1  ;;  %v584_v2 = vsel %vm393_vm7, %v583_v58, %v1158_v38  ;;  %v573_v1 = vsel %vm389_vm8, %v572_v56, %v490_v35  ;;  %v510_v41 = vsel %vm509_vm2, %v507_v46, %v508_v63 }
  0xcb   : > { %vm543_vm3 = vcmp.lt.s32.totalorder %v541_v28, %v542_v62  ;;  %v557_v45 = vrot.slane %v556_v37, 1  ;;  %v585_v5 = vsel %vm395_vm15, %v584_v2, %v538_v30  ;;  %v574_v8 = vsel %vm391_vm10, %v573_v1, %v510_v41 }
  0xcc   : > { %v544_v4 = vsel %vm543_vm3, %v541_v28, %v542_v62  ;;  %vm529_vm6 = vcmp.lt.s32.totalorder %v527_v59, %v528_v60  ;;  %vm1343_vm13 = vcmask 1046528  }
  0xcd   : > { %v545_v54 = vrot.slane %v544_v4, 2  ;;  %v558_v6 = vmax.f32 %v556_v37, %v557_v45  ;;  %v530_v9 = vsel %vm529_vm6, %v527_v59, %v528_v60  ;;  %vm1344_vm3 = vmmov %vm1343_vm13 }
  0xce   : > { %v575_v15 = vsel %vm393_vm7, %v574_v8, %v530_v9 }
  0xcf   : > { %vm546_vm11 = vcmp.lt.s32.totalorder %v544_v4, %v545_v54  ;;  %vm559_vm12 = vcmp.ge.f32.partialorder %v551_v19, %v558_v6  ;;  %v586_v42 = vsel %vm1343_vm13, %v585_v5, %v558_v6 }
  0xd0   : > { %v547_v38 = vsel %vm546_vm11, %v544_v4, %v545_v54  ;;  %v560_v10 = vsel %vm559_vm12, %v992_v13, 8  ;;  %v1193_v11 = vadd.f32 %v890_v7, %v586_v42 }
  0xd1   : > { %v548_v3 = vrot.slane %v547_v38, 1  ;;  %v561_v14 = vsel %vm203_vm0, %v560_v10, 2147483647 }
  0xd2   : > { %v562_v16 = vrot.slane %v561_v14, 4  ;;  %v1199_v57 = vadd.f32 %v1193_v11, %v964_v0  ;;  %v1203_v19 = vadd.f32 %v1193_v11, %v999_v18  ;;  %v1207_v20 = vadd.f32 %v1193_v11, %v1009_v27 }
  0xd3   : > { %vm549_vm9 = vcmp.lt.s32.totalorder %v547_v38, %v548_v3  ;;  %v1211_v21 = vadd.f32 %v1193_v11, %v997_v17  ;;  %v1215_v22 = vadd.f32 %v1193_v11, %v1007_v26  ;;  %v1219_v0 = vadd.f32 %v1193_v11, %v1025_v40 }
  0xd4   : > { %v550_v23 = vsel %vm549_vm9, %v547_v38, %v548_v3  ;;  %vm563_vm14 = vcmp.lt.s32.totalorder %v561_v14, %v562_v16  ;;  %v591_v18 = vsel %vm203_vm0, %v1199_v57, -inf  ;;  %v611_v27 = vsel %vm203_vm0, %v1203_v19, -inf }
  0xd5   : > { %v564_v24 = vsel %vm563_vm14, %v561_v14, %v562_v16  ;;  %v576_v17 = vsel %vm395_vm15, %v575_v15, %v550_v23  ;;  %v592_v31 = vrot.slane %v591_v18, 4  ;;  %v612_v32 = vrot.slane %v611_v27, 4 }
  0xd6   : > { %v565_v29 = vrot.slane %v564_v24, 2  ;;  %v631_v26 = vsel %vm203_vm0, %v1207_v20, -inf  ;;  %v651_v40 = vsel %vm203_vm0, %v1211_v21, -inf  ;;  %v671_v33 = vsel %vm203_vm0, %v1215_v22, -inf }
  0xd7   : > { %v593_v61 = vmax.f32 %v591_v18, %v592_v31  ;;  %v613_v34 = vmax.f32 %v611_v27, %v612_v32  ;;  %v632_v43 = vrot.slane %v631_v26, 4  ;;  %v652_v44 = vrot.slane %v651_v40, 4 }
  0xd8   : > { %vm566_vm1 = vcmp.lt.s32.totalorder %v564_v24, %v565_v29  ;;  %v672_v12 = vrot.slane %v671_v33, 4  ;;  %v691_v46 = vsel %vm203_vm0, %v1219_v0, -inf  ;;  %v1236_v30 = vadd.f32 %v1193_v11, %v1023_v39 }
  0xd9   : > { %v567_v47 = vsel %vm566_vm1, %v564_v24, %v565_v29  ;;  %v594_v48 = vrot.slane %v593_v61, 2  ;;  %v614_v36 = vrot.slane %v613_v34, 2  ;;  %v633_v49 = vmax.f32 %v631_v26, %v632_v43 }
  0xda   : > { %v568_v63 = vrot.slane %v567_v47, 1  ;;  %v653_v50 = vmax.f32 %v651_v40, %v652_v44  ;;  %v673_v51 = vmax.f32 %v671_v33, %v672_v12  ;;  %v692_v52 = vrot.slane %v691_v46, 4 }
  0xdb   : > { %v595_v55 = vmax.f32 %v593_v61, %v594_v48  ;;  %v615_v25 = vmax.f32 %v613_v34, %v614_v36  ;;  %v634_v28 = vrot.slane %v633_v49, 2  ;;  %v711_v56 = vsel %vm203_vm0, %v1236_v30, -inf }
  0xdc   : > { %vm569_vm2 = vcmp.lt.s32.totalorder %v567_v47, %v568_v63  ;;  %v654_v58 = vrot.slane %v653_v50, 2  ;;  %v674_v59 = vrot.slane %v673_v51, 2  ;;  %v693_v62 = vmax.f32 %v691_v46, %v692_v52 }
  0xdd   : > { %v570_v39 = vsel %vm569_vm2, %v567_v47, %v568_v63  ;;  %v596_v37 = vrot.slane %v595_v55, 1  ;;  %v616_v35 = vrot.slane %v615_v25, 1  ;;  %v635_v60 = vmax.f32 %v633_v49, %v634_v28 }
  0xde   : > { %v577_v2 = vsel %vm1344_vm3, %v576_v17, %v570_v39  ;;  %v655_v45 = vmax.f32 %v653_v50, %v654_v58  ;;  %v675_v1 = vmax.f32 %v673_v51, %v674_v59  ;;  %v694_v4 = vrot.slane %v693_v62, 2 }
  0xdf   : > { %579 = vst.msk [vmem:[#allocation2 + $0x10] sm:$0xff] %vm203_vm0, %v577_v2  ;;  %v1242_v5 = vmax.f32 %v595_v55, %v596_v37  ;;  %v1244_v41 = vmax.f32 %v615_v25, %v616_v35  ;;  %v636_v54 = vrot.slane %v635_v60, 1  ;;  %v712_v9 = vrot.slane %v711_v56, 4 }
  0xe0   : > { %v656_v6 = vrot.slane %v655_v45, 1  ;;  %v676_v7 = vrot.slane %v675_v1, 1  ;;  %v695_v8 = vmax.f32 %v693_v62, %v694_v4  ;;  %v730_v36 = vadd.f32 %v1193_v11, %v1039_v53 }
  0xe1   : > { %vm598_vm6 = vcmp.ge.f32.partialorder %v1199_v57, %v1242_v5  ;;  %vm618_vm11 = vcmp.ge.f32.partialorder %v1203_v19, %v1244_v41  ;;  %v1250_v42 = vmax.f32 %v635_v60, %v636_v54  ;;  %v713_v12 = vmax.f32 %v711_v56, %v712_v9 }
  0xe2   : > { %v599_v38 = vsel %vm598_vm6, %v992_v13, 8  ;;  %v619_v10 = vsel %vm618_vm11, %v992_v13, 8  ;;  %v1254_v3 = vmax.f32 %v655_v45, %v656_v6  ;;  %v1256_v14 = vmax.f32 %v675_v1, %v676_v7 }
  0xe3   : > { %v600_v15 = vsel %vm203_vm0, %v599_v38, 2147483647  ;;  %v620_v16 = vsel %vm203_vm0, %v619_v10, 2147483647  ;;  %vm638_vm12 = vcmp.ge.f32.partialorder %v1207_v20, %v1250_v42  ;;  %v696_v57 = vrot.slane %v695_v8, 1 }
  0xe4   : > { %v601_v19 = vrot.slane %v600_v15, 4  ;;  %v621_v23 = vrot.slane %v620_v16, 4  ;;  %v639_v18 = vsel %vm638_vm12, %v992_v13, 8  ;;  %vm658_vm13 = vcmp.ge.f32.partialorder %v1211_v21, %v1254_v3 }
  0xe5   : > { %v640_v27 = vsel %vm203_vm0, %v639_v18, 2147483647  ;;  %v659_v24 = vsel %vm658_vm13, %v992_v13, 8  ;;  %vm678_vm9 = vcmp.ge.f32.partialorder %v1215_v22, %v1256_v14  ;;  %v1269_v17 = vmax.f32 %v695_v8, %v696_v57 }
  0xe6   : > { %vm602_vm14 = vcmp.lt.s32.totalorder %v600_v15, %v601_v19  ;;  %vm622_vm1 = vcmp.lt.s32.totalorder %v620_v16, %v621_v23  ;;  %v641_v20 = vrot.slane %v640_v27, 4  ;;  %v660_v31 = vsel %vm203_vm0, %v659_v24, 2147483647 }
  0xe7   : > { %v603_v32 = vsel %vm602_vm14, %v600_v15, %v601_v19  ;;  %v623_v29 = vsel %vm622_vm1, %v620_v16, %v621_v23  ;;  %v661_v26 = vrot.slane %v660_v31, 4  ;;  %v679_v40 = vsel %vm678_vm9, %v992_v13, 8  ;;  %v891_v23 = vld [vmem:[%s979_s29 + $0x18] sm:$0xff] }
  0xe8   : > { %v604_v21 = vrot.slane %v603_v32, 2  ;;  %v624_v33 = vrot.slane %v623_v29, 2  ;;  %vm642_vm2 = vcmp.lt.s32.totalorder %v640_v27, %v641_v20  ;;  %v680_v61 = vsel %vm203_vm0, %v679_v40, 2147483647 }
  0xe9   : > { %v643_v34 = vsel %vm642_vm2, %v640_v27, %v641_v20  ;;  %vm662_vm3 = vcmp.lt.s32.totalorder %v660_v31, %v661_v26  ;;  %v681_v22 = vrot.slane %v680_v61, 4  ;;  %vm698_vm11 = vcmp.ge.f32.partialorder %v1219_v0, %v1269_v17  ;;  %v769_v27 = vld [vmem:[%s1340_s3] sm:$0xff] }
  0xea   : > { %vm605_vm6 = vcmp.lt.s32.totalorder %v603_v32, %v604_v21  ;;  %vm625_vm12 = vcmp.lt.s32.totalorder %v623_v29, %v624_v33  ;;  %v644_v43 = vrot.slane %v643_v34, 2  ;;  %v663_v44 = vsel %vm662_vm3, %v660_v31, %v661_v26 }
  0xeb   : > { %v606_v46 = vsel %vm605_vm6, %v603_v32, %v604_v21  ;;  %vm682_vm13 = vcmp.lt.s32.totalorder %v680_v61, %v681_v22  ;;  %v699_v47 = vsel %vm698_vm11, %v992_v13, 8  ;;  %v626_v48 = vsel %vm625_vm12, %v623_v29, %v624_v33 }
  0xec   : > { %vm645_vm9 = vcmp.lt.s32.totalorder %v643_v34, %v644_v43  ;;  %v664_v49 = vrot.slane %v663_v44, 2  ;;  %v607_v63 = vrot.slane %v606_v46, 1  ;;  %v683_v50 = vsel %vm682_vm13, %v680_v61, %v681_v22 }
  0xed   : > { %v700_v51 = vsel %vm203_vm0, %v699_v47, 2147483647  ;;  %v714_v52 = vrot.slane %v713_v12, 2  ;;  %v627_v0 = vrot.slane %v626_v48, 1  ;;  %v646_v25 = vsel %vm645_vm9, %v643_v34, %v644_v43 }
  0xee   : > { %v701_v55 = vrot.slane %v700_v51, 4  ;;  %v731_v56 = vsel %vm203_vm0, %v730_v36, -inf  ;;  %v684_v58 = vrot.slane %v683_v50, 2  ;;  %vm608_vm1 = vcmp.lt.s32.totalorder %v606_v46, %v607_v63 }
  0xef   : > { %v715_v28 = vmax.f32 %v713_v12, %v714_v52  ;;  %v732_v59 = vrot.slane %v731_v56, 4  ;;  %vm665_vm2 = vcmp.lt.s32.totalorder %v663_v44, %v664_v49  ;;  %vm628_vm3 = vcmp.lt.s32.totalorder %v626_v48, %v627_v0 }
  0xf0   : > { %vm702_vm14 = vcmp.lt.s32.totalorder %v700_v51, %v701_v55  ;;  %v647_v11 = vrot.slane %v646_v25, 1  ;;  %v759_v37 = vsel %vm385_vm4, %v1242_v5, %v1244_v41  ;;  %v666_v45 = vsel %vm665_vm2, %v663_v44, %v664_v49 }
  0xf1   : > { %v703_v62 = vsel %vm702_vm14, %v700_v51, %v701_v55  ;;  %v716_v53 = vrot.slane %v715_v28, 1  ;;  %v733_v39 = vmax.f32 %v731_v56, %v732_v59  ;;  %v760_v2 = vsel %vm387_vm5, %v759_v37, %v1250_v42 }
  0xf2   : > { %v704_v35 = vrot.slane %v703_v62, 2  ;;  %vm685_vm6 = vcmp.lt.s32.totalorder %v683_v50, %v684_v58  ;;  %v761_v4 = vsel %vm389_vm8, %v760_v2, %v1254_v3  ;;  %v609_v54 = vsel %vm608_vm1, %v606_v46, %v607_v63 }
  0xf3   : > { %v717_v60 = vmax.f32 %v715_v28, %v716_v53  ;;  %v734_v1 = vrot.slane %v733_v39, 2  ;;  %v629_v6 = vsel %vm628_vm3, %v626_v48, %v627_v0  ;;  %v762_v7 = vsel %vm391_vm10, %v761_v4, %v1256_v14 }
  0xf4   : > { %vm648_vm12 = vcmp.lt.s32.totalorder %v646_v25, %v647_v11  ;;  %v763_v8 = vsel %vm393_vm7, %v762_v7, %v1269_v17  ;;  %v667_v42 = vrot.slane %v666_v45, 1  ;;  %v686_v9 = vsel %vm685_vm6, %v683_v50, %v684_v58 }
  0xf5   : > { %vm718_vm11 = vcmp.ge.f32.partialorder %v1236_v30, %v717_v60  ;;  %v735_v41 = vmax.f32 %v733_v39, %v734_v1  ;;  %vm705_vm13 = vcmp.lt.s32.totalorder %v703_v62, %v704_v35  ;;  %v649_v15 = vsel %vm648_vm12, %v646_v25, %v647_v11 }
  0xf6   : > { %v719_v5 = vsel %vm718_vm11, %v992_v13, 8  ;;  %v750_v30 = vsel %vm385_vm4, %v609_v54, %v629_v6  ;;  %v764_v14 = vsel %vm395_vm15, %v763_v8, %v717_v60  ;;  %v687_v16 = vrot.slane %v686_v9, 1 }
  0xf7   : > { %v720_v38 = vsel %vm203_vm0, %v719_v5, 2147483647  ;;  %v736_v3 = vrot.slane %v735_v41, 1  ;;  %v706_v57 = vsel %vm705_vm13, %v703_v62, %v704_v35  ;;  %vm668_vm14 = vcmp.lt.s32.totalorder %v666_v45, %v667_v42 }
  0xf8   : > { %v721_v10 = vrot.slane %v720_v38, 4  ;;  %v751_v17 = vsel %vm387_vm5, %v750_v30, %v649_v15  ;;  %vm1345_vm2 = vcmask 1046528   ;;  %v707_v31 = vrot.slane %v706_v57, 1 }
  0xf9   : > { %v737_v19 = vmax.f32 %v735_v41, %v736_v3  ;;  %v669_v26 = vsel %vm668_vm14, %v666_v45, %v667_v42  ;;  %vm688_vm4 = vcmp.lt.s32.totalorder %v686_v9, %v687_v16  ;;  %v805_v42 = vld [vmem:[#allocation2 + $0x10] sm:$0xff] }
  0xfa   : > { %vm722_vm9 = vcmp.lt.s32.totalorder %v720_v38, %v721_v10  ;;  %v752_v61 = vsel %vm389_vm8, %v751_v17, %v669_v26  ;;  %v689_v43 = vsel %vm688_vm4, %v686_v9, %v687_v16  ;;  %vm708_vm6 = vcmp.lt.s32.totalorder %v706_v57, %v707_v31 }
  0xfb   : > { %v723_v18 = vsel %vm722_vm9, %v720_v38, %v721_v10  ;;  %vm738_vm1 = vcmp.ge.f32.partialorder %v730_v36, %v737_v19  ;;  %v765_v20 = vsel %vm1345_vm2, %v764_v14, %v737_v19  ;;  %v753_v46 = vsel %vm391_vm10, %v752_v61, %v689_v43  ;;  %vm1346_vm10 = vmmov %vm1345_vm2 }
  0xfc   : > { %v724_v24 = vrot.slane %v723_v18, 2  ;;  %v739_v32 = vsel %vm738_vm1, %v992_v13, 8  ;;  %v768_v29 = vadd.f32 %v891_v23, %v765_v20  ;;  %v709_v36 = vsel %vm708_vm6, %v706_v57, %v707_v31  ;;  %v817_v57 = vld [vmem:[#allocation2 + $0x8] sm:$0xff] }
  0xfd   : > { %v740_v40 = vsel %vm203_vm0, %v739_v32, 2147483647  ;;  %v754_v63 = vsel %vm393_vm7, %v753_v46, %v709_v36  ;;  %vm791_vm9 = vcmask 0  }
  0xfe   : > { %vm725_vm3 = vcmp.lt.s32.totalorder %v723_v18, %v724_v24  ;;  %v741_v33 = vrot.slane %v740_v40, 4  ;;  %v770_v34 = vadd.f32 %v769_v27, %v768_v29 }
  0xff   : > { %v726_v21 = vsel %vm725_vm3, %v723_v18, %v724_v24 }
 0x100   : > { %v727_v22 = vrot.slane %v726_v21, 1  ;;  %vm742_vm5 = vcmp.lt.s32.totalorder %v740_v40, %v741_v33  ;;  %v771_v44 = vsel %vm203_vm0, %v770_v34, -inf }
 0x101   : > { %v743_v12 = vsel %vm742_vm5, %v740_v40, %v741_v33  ;;  %v772_v47 = vrot.slane %v771_v44, 4 }
 0x102   : > { %v744_v48 = vrot.slane %v743_v12, 2  ;;  %vm728_vm11 = vcmp.lt.s32.totalorder %v726_v21, %v727_v22 }
 0x103   : > { %v773_v49 = vmax.f32 %v771_v44, %v772_v47  ;;  %v729_v52 = vsel %vm728_vm11, %v726_v21, %v727_v22 }
 0x104   : > { %vm745_vm12 = vcmp.lt.s32.totalorder %v743_v12, %v744_v48  ;;  %v755_v55 = vsel %vm395_vm15, %v754_v63, %v729_v52 }
 0x105   : > { %v746_v50 = vsel %vm745_vm12, %v743_v12, %v744_v48  ;;  %v774_v51 = vrot.slane %v773_v49, 2 }
 0x106   : > { %v747_v0 = vrot.slane %v746_v50, 1 }
 0x107   : > { %v775_v25 = vmax.f32 %v773_v49, %v774_v51 }
 0x108   : > { %vm748_vm8 = vcmp.lt.s32.totalorder %v746_v50, %v747_v0 }
 0x109   : > { %v749_v28 = vsel %vm748_vm8, %v746_v50, %v747_v0  ;;  %v776_v56 = vrot.slane %v775_v25, 1 }
 0x10a   : > { %v756_v58 = vsel %vm1346_vm10, %v755_v55, %v749_v28 }
 0x10b   : > { %758 = vst.msk [vmem:[#allocation2 + $0x18] sm:$0xff] %vm203_vm0, %v756_v58  ;;  %v777_v59 = vmax.f32 %v775_v25, %v776_v56 }
 0x10d   : > { %vm778_vm13 = vcmp.ge.f32.partialorder %v770_v34, %v777_v59 }
 0x10e   : > { %v779_v62 = vsel %vm778_vm13, %v992_v13, 8 }
 0x10f   : > { %v780_v53 = vsel %vm203_vm0, %v779_v62, 2147483647 }
 0x110   : > { %v781_v11 = vrot.slane %v780_v53, 4 }
 0x112   : > { %vm782_vm7 = vcmp.lt.s32.totalorder %v780_v53, %v781_v11  ;;  %v793_v45 = vld [vmem:[#allocation2 + $0x18] sm:$0xff] }
 0x113   : > { %v783_v39 = vsel %vm782_vm7, %v780_v53, %v781_v11 }
 0x114   : > { %v784_v37 = vrot.slane %v783_v39, 2 }
 0x116   : > { %vm785_vm15 = vcmp.lt.s32.totalorder %v783_v39, %v784_v37 }
 0x117   : > { %v786_v35 = vsel %vm785_vm15, %v783_v39, %v784_v37 }
 0x118   : > { %v787_v60 = vrot.slane %v786_v35, 1 }
 0x11a   : > { %vm788_vm14 = vcmp.lt.s32.totalorder %v786_v35, %v787_v60 }
 0x11b   : > { %v789_v2 = vsel %vm788_vm14, %v786_v35, %v787_v60 }
 0x11c   : > { %892 = vst.msk [vmem:[%s1318_s11 + $0x3] sm:$0x1] %vm791_vm9, %v789_v2  ;;  %vm794_vm1 = vcmp.eq.s32.totalorder %v992_v13, %v789_v2 }
 0x11d   : > { %v795_v1 = vsel %vm794_vm1, %v793_v45, 0 }
 0x11e   : > { %v796_v4 = vsel %vm203_vm0, %v795_v1, 0 }
 0x11f   : > { %v797_v54 = vrot.slane %v796_v4, 4 }
 0x121   : > { %v798_v6 = vadd.s32 %v797_v54, %v796_v4 }
 0x123   : > { %v799_v7 = vrot.slane %v798_v6, 2 }
 0x125   : > { %v800_v5 = vadd.s32 %v799_v7, %v798_v6 }
 0x127   : > { %v801_v41 = vrot.slane %v800_v5, 1 }
 0x129   : > { %v802_v8 = vadd.s32 %v801_v41, %v800_v5 }
 0x12b   : > { %893 = vst.msk [vmem:[%s1318_s11 + $0x2] sm:$0x1] %vm791_vm9, %v802_v8  ;;  %vm806_vm2 = vcmp.eq.s32.totalorder %v992_v13, %v802_v8 }
 0x12c   : > { %v807_v9 = vsel %vm806_vm2, %v805_v42, 0 }
 0x12d   : > { %v808_v38 = vsel %vm203_vm0, %v807_v9, 0 }
 0x12e   : > { %v809_v10 = vrot.slane %v808_v38, 4 }
 0x130   : > { %v810_v3 = vadd.s32 %v809_v10, %v808_v38 }
 0x132   : > { %v811_v15 = vrot.slane %v810_v3, 2 }
 0x134   : > { %v812_v30 = vadd.s32 %v811_v15, %v810_v3 }
 0x136   : > { %v813_v14 = vrot.slane %v812_v30, 1 }
 0x138   : > { %v814_v16 = vadd.s32 %v813_v14, %v812_v30 }
 0x13a   : > { %894 = vst.msk [vmem:[%s1318_s11 + $0x1] sm:$0x1] %vm791_vm9, %v814_v16  ;;  %vm818_vm4 = vcmp.eq.s32.totalorder %v992_v13, %v814_v16 }
 0x13b   : > { %v819_v19 = vsel %vm818_vm4, %v817_v57, 0 }
 0x13c   : > { %v820_v23 = vsel %vm203_vm0, %v819_v19, 0 }
 0x13d   : > { %v821_v18 = vrot.slane %v820_v23, 4 }
 0x13f   : > { %v822_v27 = vadd.s32 %v821_v18, %v820_v23 }
 0x141   : > { %v823_v24 = vrot.slane %v822_v27, 2 }
 0x143   : > { %v824_v17 = vadd.s32 %v823_v24, %v822_v27 }
 0x145   : > { %v825_v20 = vrot.slane %v824_v17, 1 }
 0x147   : > { %v826_v31 = vadd.s32 %v825_v20, %v824_v17 }
 0x149   : > { %827 = vst.msk [vmem:[%s1318_s11] sm:$0x1] %vm791_vm9, %v826_v31 }
 0x14a PF: > { %s14_s15 = sadd.s32 1, %s919_s15  }
 0x14b   : > { %p11_p4 = scmp.ge.s32.totalorder %s14_s15, 4  }
 0x14d   :  { %13 = sbr.rel (!%p11_p4) target bundleno = 1 (0x1), region = 75 }

</bundles_post_ra>
